<compile_context>
chip_gen: v7x
topology: tpu7x:2x2x1
jax: 0.10.0
libtpu: 0.0.40
codegen_flags: <defaults>
</compile_context>

<pallas_src>
import functools
import math

import numpy as np
import jax
import jax.numpy as jnp
from jax.experimental import pallas as pl
from jax.experimental.pallas import tpu as pltpu


# Column layout of the packed per-channel parameter slab (Cout, 10 + 2*Cout).
_N_VEC = 10
(_BN_R_G, _BN_R_B, _BN_P_G, _BN_P_B,
 _CONV_R_B, _PBN_R_G, _PBN_R_B,
 _CONV_P_B, _PBN_P_G, _PBN_P_B) = range(_N_VEC)


# ----------------------------------------------------------------------------
# atan2 built from Mosaic-supported primitives (cephes-style range reduction +
# odd polynomial).  Divides routed through pl.reciprocal -> EUP slot.
# ----------------------------------------------------------------------------
def _sign(z):
    return jnp.where(z > 0.0, 1.0, jnp.where(z < 0.0, -1.0, 0.0))


def _atan(z):
    s = _sign(z)
    a = jnp.abs(z)
    big = a > 2.414213562373095       # tan(3*pi/8)
    mid = a > 0.4142135623730951      # tan(pi/8)
    safe_a = jnp.where(a == 0.0, 1.0, a)
    inv_a = pl.reciprocal(safe_a, approx=True)        # EUP, frees the VALU
    inv_ap1 = pl.reciprocal(a + 1.0, approx=True)
    x = jnp.where(big, -inv_a, jnp.where(mid, (a - 1.0) * inv_ap1, a))
    bias = jnp.where(big, jnp.float32(math.pi / 2),
                     jnp.where(mid, jnp.float32(math.pi / 4), jnp.float32(0.0)))
    zz = x * x
    poly = (((8.05374449538e-2 * zz - 1.38776856032e-1) * zz
             + 1.99777106478e-1) * zz - 3.33329491539e-1) * zz * x + x
    return s * (poly + bias)


def _atan2(y, x):
    pi = jnp.float32(math.pi)
    safe_x = jnp.where(x == 0.0, 1.0, x)
    base = _atan(y * pl.reciprocal(safe_x, approx=True))
    res = jnp.where(x > 0.0, base,
                    jnp.where(y >= 0.0, base + pi, base - pi))
    res = jnp.where(x == 0.0,
                    jnp.where(y > 0.0, pi / 2,
                              jnp.where(y < 0.0, -pi / 2, 0.0)),
                    res)
    return res


# ----------------------------------------------------------------------------
# Fused kernel.  Training-mode BatchNorm couples the whole (batch, modes)
# extent, so the full forward runs as one VMEM-resident block (no grid).
# ----------------------------------------------------------------------------
def _spectral_conv1d_kernel(x_ref, dft_ref, w_ref, prm_ref, out_ref):
    CB, L = x_ref.shape                      # rows ordered (channel, batch)
    M = dft_ref.shape[1] // 2
    Cin, Cout, _ = w_ref.shape
    B = CB // Cin
    rows, lanes_pad = out_ref.shape          # rows == B * Cout

    # --- windowed rfft (window folded into basis): ONE fused MXU matmul -----
    xft = jnp.dot(x_ref[...], dft_ref[...],
                  preferred_element_type=jnp.float32)        # (Cin*B, 2M)
    x_re = xft[:, :M]
    x_im = xft[:, M:]

    # --- complex channel mixing: einsum('bix,iox->box', x_ft, W1+W2) --------
    # Weight load hoisted out of the (tiny, statically unrolled) Cin loop.
    W = w_ref[...]                                           # (Cin, Cout, 2M)
    out_re = jnp.zeros((B, Cout, M), jnp.float32)
    out_im = jnp.zeros((B, Cout, M), jnp.float32)
    for i in range(Cin):
        xr = x_re[i * B:(i + 1) * B, :][:, None, :]          # (B, 1, M)
        xi = x_im[i * B:(i + 1) * B, :][:, None, :]
        wr = W[i, :, :M][None, :, :]                         # (1, Cout, M)
        wi = W[i, :, M:][None, :, :]
        out_re = out_re + xr * wr - xi * wi
        out_im = out_im + xr * wi + xi * wr

    # --- magnitude / phase ---------------------------------------------------
    r = jnp.sqrt(out_re * out_re + out_im * out_im)
    p = _atan2(out_im, out_re)

    # --- unpack the packed parameter slab (single DMA) -----------------------
    prm = prm_ref[...]                                       # (Cout, 10+2Cout)

    def pcol(k):                                             # (1, Cout, 1)
        return prm[:, k:k + 1][None, :, :]

    conv_r_w = prm[:, _N_VEC:_N_VEC + Cout]                  # (Cout[o], Cout[c])
    conv_p_w = prm[:, _N_VEC + Cout:_N_VEC + 2 * Cout]

    # --- BatchNorm1d, training mode, single-pass stats (biased var, eps) ----
    def batch_norm(v, gamma, beta):
        mean = jnp.mean(v, axis=(0, 2), keepdims=True)       # (1, Cout, 1)
        msq = jnp.mean(v * v, axis=(0, 2), keepdims=True)
        var = msq - mean * mean
        return (v - mean) * (jax.lax.rsqrt(var + 1e-5) * gamma) + beta

    # --- 1x1 Conv1d: y[b,o,m] = sum_c w[o,c]*v[b,c,m] + bias[o] -------------
    def conv1x1(v, w, bias):
        acc = jnp.zeros((B, Cout, M), jnp.float32)
        for c in range(Cout):                                # static unroll
            acc = acc + v[:, c:c + 1, :] * w[:, c:c + 1][None, :, :]
        return acc + bias

    r = batch_norm(r, pcol(_BN_R_G), pcol(_BN_R_B))
    p = batch_norm(p, pcol(_BN_P_G), pcol(_BN_P_B))

    # projection_r: Conv1d -> BN -> ReLU
    r = conv1x1(r, conv_r_w, pcol(_CONV_R_B))
    r = batch_norm(r, pcol(_PBN_R_G), pcol(_PBN_R_B))
    r = jnp.maximum(r, 0.0)

    # projection_p: Conv1d -> BN -> Tanh
    p = conv1x1(p, conv_p_w, pcol(_CONV_P_B))
    p = batch_norm(p, pcol(_PBN_P_G), pcol(_PBN_P_B))
    p = jnp.tanh(p)

    feat = r + p                                             # (B, Cout, M)

    # --- lane-dense packed output --------------------------------------------
    # Scatter the three (B*Cout, M) payloads into one (B*Cout, lanes_pad) slab
    # via 0/1 placement matmuls so the final store is a single full-width
    # unmasked vst (no masked partial stores, no full out_ft zero-fill).
    feat2 = feat.reshape(rows, M)
    ore2 = out_re.reshape(rows, M)
    oim2 = out_im.reshape(rows, M)
    lane = jax.lax.broadcasted_iota(jnp.int32, (M, lanes_pad), 1)
    mrow = jax.lax.broadcasted_iota(jnp.int32, (M, lanes_pad), 0)
    one = jnp.float32(1.0)
    zero = jnp.float32(0.0)
    sel0 = jnp.where(lane == mrow, one, zero)
    sel1 = jnp.where(lane == mrow + M, one, zero)
    sel2 = jnp.where(lane == mrow + 2 * M, one, zero)
    packed = (jnp.dot(feat2, sel0, preferred_element_type=jnp.float32)
              + jnp.dot(ore2, sel1, preferred_element_type=jnp.float32)
              + jnp.dot(oim2, sel2, preferred_element_type=jnp.float32))
    out_ref[...] = packed


# ----------------------------------------------------------------------------
# Parameter init (deterministic, mirrors the PyTorch module's shapes/dists).
# ----------------------------------------------------------------------------
def init_spectral_conv1d_params(key, in_channels, out_channels, modes1):
    ks = jax.random.split(key, 8)
    scale = 1.0 / (in_channels * out_channels)
    shape_w = (in_channels, out_channels, modes1)
    w1_re = scale * jax.random.uniform(ks[0], shape_w, jnp.float32)
    w1_im = scale * jax.random.uniform(ks[1], shape_w, jnp.float32)
    w2_re = scale * jax.random.uniform(ks[2], shape_w, jnp.float32)
    w2_im = scale * jax.random.uniform(ks[3], shape_w, jnp.float32)

    bound = 1.0 / math.sqrt(out_channels)
    conv_r_w = jax.random.uniform(ks[4], (out_channels, out_channels),
                                  jnp.float32, -bound, bound)
    conv_r_b = jax.random.uniform(ks[5], (out_channels,), jnp.float32, -bound, bound)
    conv_p_w = jax.random.uniform(ks[6], (out_channels, out_channels),
                                  jnp.float32, -bound, bound)
    conv_p_b = jax.random.uniform(ks[7], (out_channels,), jnp.float32, -bound, bound)

    ones = jnp.ones((out_channels,), jnp.float32)
    zeros = jnp.zeros((out_channels,), jnp.float32)
    return dict(
        # out_ft uses compl_mul(x, W1) + compl_mul(x, W2) == compl_mul(x, W1+W2)
        w_re=w1_re + w2_re, w_im=w1_im + w2_im,
        bn_r_gamma=ones, bn_r_beta=zeros,
        bn_p_gamma=ones, bn_p_beta=zeros,
        conv_r_w=conv_r_w, conv_r_b=conv_r_b,
        pbn_r_gamma=ones, pbn_r_beta=zeros,
        conv_p_w=conv_p_w, conv_p_b=conv_p_b,
        pbn_p_gamma=ones, pbn_p_beta=zeros,
    )


# ----------------------------------------------------------------------------
# Precomputed (cached) windowed DFT basis: hann window folded into the
# rfft(norm='ortho') basis for the first `modes1` bins, real|imag fused.
# ----------------------------------------------------------------------------
@functools.lru_cache(maxsize=None)
def _windowed_dft_basis(L, M):
    t = np.arange(L, dtype=np.float64)
    k = np.arange(M, dtype=np.float64)
    win = 0.5 - 0.5 * np.cos(2.0 * np.pi * t / L)       # periodic hann
    ang = 2.0 * np.pi * np.outer(t, k) / L              # (L, M)
    s = 1.0 / np.sqrt(L)
    re = np.cos(ang) * s
    im = -np.sin(ang) * s
    basis = win[:, None] * np.concatenate([re, im], axis=1)   # (L, 2M)
    return jnp.asarray(basis, dtype=jnp.float32)


def _pack_params(params):
    vecs = jnp.stack(
        [params["bn_r_gamma"], params["bn_r_beta"],
         params["bn_p_gamma"], params["bn_p_beta"],
         params["conv_r_b"], params["pbn_r_gamma"], params["pbn_r_beta"],
         params["conv_p_b"], params["pbn_p_gamma"], params["pbn_p_beta"]],
        axis=1)                                              # (Cout, 10)
    return jnp.concatenate([vecs, params["conv_r_w"], params["conv_p_w"]],
                           axis=1)                           # (Cout, 10+2Cout)


# ----------------------------------------------------------------------------
# Wrapper: layout plumbing (flatten x, pack params/weights) + pallas_call +
# out_ft zero-pad / complex re-assembly.
# ----------------------------------------------------------------------------
@functools.partial(jax.jit, static_argnames=("modes1",))
def spectral_conv1d_forward(params, x, modes1):
    B, Cin, L = x.shape
    Cout = params["w_re"].shape[1]
    M = modes1
    Mfull = L // 2 + 1
    assert M <= Mfull

    # (B, Cin, L) -> (Cin*B, L): channel-contiguous row blocks for the kernel.
    x2 = jnp.transpose(x, (1, 0, 2)).reshape(Cin * B, L)
    dft = _windowed_dft_basis(L, M)                          # (L, 2M)
    w_all = jnp.concatenate([params["w_re"], params["w_im"]], axis=-1)
    pslab = _pack_params(params)

    rows = B * Cout
    lanes_pad = ((3 * M + 127) // 128) * 128                 # lane-dense slab

    vmem = pl.BlockSpec(memory_space=pltpu.MemorySpace.VMEM)
    slab = pl.pallas_call(
        _spectral_conv1d_kernel,
        out_shape=jax.ShapeDtypeStruct((rows, lanes_pad), jnp.float32),
        in_specs=[vmem, vmem, vmem, vmem],
        out_specs=vmem,
    )(x2, dft, w_all, pslab)

    feat = slab[:, :M].reshape(B, Cout, M)
    oft_re = slab[:, M:2 * M].reshape(B, Cout, M)
    oft_im = slab[:, 2 * M:3 * M].reshape(B, Cout, M)
    pad = ((0, 0), (0, 0), (0, Mfull - M))
    out_ft = jax.lax.complex(jnp.pad(oft_re, pad), jnp.pad(oft_im, pad))
    return feat, out_ft


if __name__ == "__main__":
    B, in_channels, out_channels, L, modes1 = 2, 4, 4, 16, 8   # fl=64 unused in fwd
    key = jax.random.PRNGKey(0)
    pkey, xkey = jax.random.split(key)
    params = init_spectral_conv1d_params(pkey, in_channels, out_channels, modes1)
    x = jax.random.normal(xkey, (B, in_channels, L), jnp.float32)

    feat, out_ft = spectral_conv1d_forward(params, x, modes1)
    jax.block_until_ready((feat, out_ft))

    assert feat.shape == (B, out_channels, modes1) and feat.dtype == jnp.float32
    assert out_ft.shape == (B, out_channels, L // 2 + 1)
    assert out_ft.dtype == jnp.complex64
    assert bool(jnp.all(jnp.isfinite(feat)))
    print("KERNEL_OK")
</pallas_src>

<mosaic_0001>
module attributes {stable_mosaic.version = 11 : i64} {
  func.func @_spectral_conv1d_kernel(%arg0: memref<8x16xf32, #tpu.memory_space<vmem>>, %arg1: memref<16x16xf32, #tpu.memory_space<vmem>>, %arg2: memref<4x4x16xf32, #tpu.memory_space<vmem>>, %arg3: memref<4x18xf32, #tpu.memory_space<vmem>>, %arg4: memref<8x128xf32, #tpu.memory_space<vmem>>) attributes {dimension_semantics = [], scalar_prefetch = 0 : i64, scratch_operands = 0 : i64, tpu.core_type = #tpu.core_type<tc>} {
    %c0 = arith.constant 0 : index
    %c0_0 = arith.constant 0 : index
    %0 = vector.load %arg0[%c0, %c0_0] : memref<8x16xf32, #tpu.memory_space<vmem>>, vector<8x16xf32>
    %c0_1 = arith.constant 0 : index
    %c0_2 = arith.constant 0 : index
    %1 = vector.load %arg1[%c0_1, %c0_2] : memref<16x16xf32, #tpu.memory_space<vmem>>, vector<16x16xf32>
    %cst = arith.constant dense<0.000000e+00> : vector<8x16xf32>
    %2 = tpu.matmul %0, %1, %cst {dimension_numbers = #tpu.dot_dimension_numbers<[1], [0], [0], [1], [0, 0, 1, 1], [], []>} : vector<8x16xf32>, vector<16x16xf32>, vector<8x16xf32> -> vector<8x16xf32>
    %3 = vector.extract_strided_slice %2 {offsets = [0, 0], sizes = [8, 8], strides = [1, 1]} : vector<8x16xf32> to vector<8x8xf32>
    %4 = vector.extract_strided_slice %2 {offsets = [0, 8], sizes = [8, 8], strides = [1, 1]} : vector<8x16xf32> to vector<8x8xf32>
    %c0_3 = arith.constant 0 : index
    %c0_4 = arith.constant 0 : index
    %c0_5 = arith.constant 0 : index
    %5 = vector.load %arg2[%c0_3, %c0_4, %c0_5] : memref<4x4x16xf32, #tpu.memory_space<vmem>>, vector<4x4x16xf32>
    %cst_6 = arith.constant 0.000000e+00 : f32
    %6 = vector.broadcast %cst_6 : f32 to vector<2x4x8xf32>
    %cst_7 = arith.constant 0.000000e+00 : f32
    %7 = vector.broadcast %cst_7 : f32 to vector<2x4x8xf32>
    %8 = vector.extract_strided_slice %3 {offsets = [0, 0], sizes = [2, 8], strides = [1, 1]} : vector<8x8xf32> to vector<2x8xf32>
    %9 = vector.shape_cast %8 : vector<2x8xf32> to vector<2x1x8xf32>
    %10 = vector.extract_strided_slice %4 {offsets = [0, 0], sizes = [2, 8], strides = [1, 1]} : vector<8x8xf32> to vector<2x8xf32>
    %11 = vector.shape_cast %10 : vector<2x8xf32> to vector<2x1x8xf32>
    %12 = vector.extract_strided_slice %5 {offsets = [0, 0, 0], sizes = [1, 4, 8], strides = [1, 1, 1]} : vector<4x4x16xf32> to vector<1x4x8xf32>
    %13 = vector.shape_cast %12 : vector<1x4x8xf32> to vector<4x8xf32>
    %14 = vector.shape_cast %13 : vector<4x8xf32> to vector<1x4x8xf32>
    %15 = vector.extract_strided_slice %5 {offsets = [0, 0, 8], sizes = [1, 4, 8], strides = [1, 1, 1]} : vector<4x4x16xf32> to vector<1x4x8xf32>
    %16 = vector.shape_cast %15 : vector<1x4x8xf32> to vector<4x8xf32>
    %17 = vector.shape_cast %16 : vector<4x8xf32> to vector<1x4x8xf32>
    %18 = vector.broadcast %9 : vector<2x1x8xf32> to vector<2x4x8xf32>
    %19 = vector.broadcast %14 : vector<1x4x8xf32> to vector<2x4x8xf32>
    %20 = arith.mulf %18, %19 : vector<2x4x8xf32>
    %21 = arith.addf %6, %20 : vector<2x4x8xf32>
    %22 = vector.broadcast %11 : vector<2x1x8xf32> to vector<2x4x8xf32>
    %23 = vector.broadcast %17 : vector<1x4x8xf32> to vector<2x4x8xf32>
    %24 = arith.mulf %22, %23 : vector<2x4x8xf32>
    %25 = arith.subf %21, %24 : vector<2x4x8xf32>
    %26 = vector.broadcast %9 : vector<2x1x8xf32> to vector<2x4x8xf32>
    %27 = vector.broadcast %17 : vector<1x4x8xf32> to vector<2x4x8xf32>
    %28 = arith.mulf %26, %27 : vector<2x4x8xf32>
    %29 = arith.addf %7, %28 : vector<2x4x8xf32>
    %30 = vector.broadcast %11 : vector<2x1x8xf32> to vector<2x4x8xf32>
    %31 = vector.broadcast %14 : vector<1x4x8xf32> to vector<2x4x8xf32>
    %32 = arith.mulf %30, %31 : vector<2x4x8xf32>
    %33 = arith.addf %29, %32 : vector<2x4x8xf32>
    %34 = vector.extract_strided_slice %3 {offsets = [2, 0], sizes = [2, 8], strides = [1, 1]} : vector<8x8xf32> to vector<2x8xf32>
    %35 = vector.shape_cast %34 : vector<2x8xf32> to vector<2x1x8xf32>
    %36 = vector.extract_strided_slice %4 {offsets = [2, 0], sizes = [2, 8], strides = [1, 1]} : vector<8x8xf32> to vector<2x8xf32>
    %37 = vector.shape_cast %36 : vector<2x8xf32> to vector<2x1x8xf32>
    %38 = vector.extract_strided_slice %5 {offsets = [1, 0, 0], sizes = [1, 4, 8], strides = [1, 1, 1]} : vector<4x4x16xf32> to vector<1x4x8xf32>
    %39 = vector.shape_cast %38 : vector<1x4x8xf32> to vector<4x8xf32>
    %40 = vector.shape_cast %39 : vector<4x8xf32> to vector<1x4x8xf32>
    %41 = vector.extract_strided_slice %5 {offsets = [1, 0, 8], sizes = [1, 4, 8], strides = [1, 1, 1]} : vector<4x4x16xf32> to vector<1x4x8xf32>
    %42 = vector.shape_cast %41 : vector<1x4x8xf32> to vector<4x8xf32>
    %43 = vector.shape_cast %42 : vector<4x8xf32> to vector<1x4x8xf32>
    %44 = vector.broadcast %35 : vector<2x1x8xf32> to vector<2x4x8xf32>
    %45 = vector.broadcast %40 : vector<1x4x8xf32> to vector<2x4x8xf32>
    %46 = arith.mulf %44, %45 : vector<2x4x8xf32>
    %47 = arith.addf %25, %46 : vector<2x4x8xf32>
    %48 = vector.broadcast %37 : vector<2x1x8xf32> to vector<2x4x8xf32>
    %49 = vector.broadcast %43 : vector<1x4x8xf32> to vector<2x4x8xf32>
    %50 = arith.mulf %48, %49 : vector<2x4x8xf32>
    %51 = arith.subf %47, %50 : vector<2x4x8xf32>
    %52 = vector.broadcast %35 : vector<2x1x8xf32> to vector<2x4x8xf32>
    %53 = vector.broadcast %43 : vector<1x4x8xf32> to vector<2x4x8xf32>
    %54 = arith.mulf %52, %53 : vector<2x4x8xf32>
    %55 = arith.addf %33, %54 : vector<2x4x8xf32>
    %56 = vector.broadcast %37 : vector<2x1x8xf32> to vector<2x4x8xf32>
    %57 = vector.broadcast %40 : vector<1x4x8xf32> to vector<2x4x8xf32>
    %58 = arith.mulf %56, %57 : vector<2x4x8xf32>
    %59 = arith.addf %55, %58 : vector<2x4x8xf32>
    %60 = vector.extract_strided_slice %3 {offsets = [4, 0], sizes = [2, 8], strides = [1, 1]} : vector<8x8xf32> to vector<2x8xf32>
    %61 = vector.shape_cast %60 : vector<2x8xf32> to vector<2x1x8xf32>
    %62 = vector.extract_strided_slice %4 {offsets = [4, 0], sizes = [2, 8], strides = [1, 1]} : vector<8x8xf32> to vector<2x8xf32>
    %63 = vector.shape_cast %62 : vector<2x8xf32> to vector<2x1x8xf32>
    %64 = vector.extract_strided_slice %5 {offsets = [2, 0, 0], sizes = [1, 4, 8], strides = [1, 1, 1]} : vector<4x4x16xf32> to vector<1x4x8xf32>
    %65 = vector.shape_cast %64 : vector<1x4x8xf32> to vector<4x8xf32>
    %66 = vector.shape_cast %65 : vector<4x8xf32> to vector<1x4x8xf32>
    %67 = vector.extract_strided_slice %5 {offsets = [2, 0, 8], sizes = [1, 4, 8], strides = [1, 1, 1]} : vector<4x4x16xf32> to vector<1x4x8xf32>
    %68 = vector.shape_cast %67 : vector<1x4x8xf32> to vector<4x8xf32>
    %69 = vector.shape_cast %68 : vector<4x8xf32> to vector<1x4x8xf32>
    %70 = vector.broadcast %61 : vector<2x1x8xf32> to vector<2x4x8xf32>
    %71 = vector.broadcast %66 : vector<1x4x8xf32> to vector<2x4x8xf32>
    %72 = arith.mulf %70, %71 : vector<2x4x8xf32>
    %73 = arith.addf %51, %72 : vector<2x4x8xf32>
    %74 = vector.broadcast %63 : vector<2x1x8xf32> to vector<2x4x8xf32>
    %75 = vector.broadcast %69 : vector<1x4x8xf32> to vector<2x4x8xf32>
    %76 = arith.mulf %74, %75 : vector<2x4x8xf32>
    %77 = arith.subf %73, %76 : vector<2x4x8xf32>
    %78 = vector.broadcast %61 : vector<2x1x8xf32> to vector<2x4x8xf32>
    %79 = vector.broadcast %69 : vector<1x4x8xf32> to vector<2x4x8xf32>
    %80 = arith.mulf %78, %79 : vector<2x4x8xf32>
    %81 = arith.addf %59, %80 : vector<2x4x8xf32>
    %82 = vector.broadcast %63 : vector<2x1x8xf32> to vector<2x4x8xf32>
    %83 = vector.broadcast %66 : vector<1x4x8xf32> to vector<2x4x8xf32>
    %84 = arith.mulf %82, %83 : vector<2x4x8xf32>
    %85 = arith.addf %81, %84 : vector<2x4x8xf32>
    %86 = vector.extract_strided_slice %3 {offsets = [6, 0], sizes = [2, 8], strides = [1, 1]} : vector<8x8xf32> to vector<2x8xf32>
    %87 = vector.shape_cast %86 : vector<2x8xf32> to vector<2x1x8xf32>
    %88 = vector.extract_strided_slice %4 {offsets = [6, 0], sizes = [2, 8], strides = [1, 1]} : vector<8x8xf32> to vector<2x8xf32>
    %89 = vector.shape_cast %88 : vector<2x8xf32> to vector<2x1x8xf32>
    %90 = vector.extract_strided_slice %5 {offsets = [3, 0, 0], sizes = [1, 4, 8], strides = [1, 1, 1]} : vector<4x4x16xf32> to vector<1x4x8xf32>
    %91 = vector.shape_cast %90 : vector<1x4x8xf32> to vector<4x8xf32>
    %92 = vector.shape_cast %91 : vector<4x8xf32> to vector<1x4x8xf32>
    %93 = vector.extract_strided_slice %5 {offsets = [3, 0, 8], sizes = [1, 4, 8], strides = [1, 1, 1]} : vector<4x4x16xf32> to vector<1x4x8xf32>
    %94 = vector.shape_cast %93 : vector<1x4x8xf32> to vector<4x8xf32>
    %95 = vector.shape_cast %94 : vector<4x8xf32> to vector<1x4x8xf32>
    %96 = vector.broadcast %87 : vector<2x1x8xf32> to vector<2x4x8xf32>
    %97 = vector.broadcast %92 : vector<1x4x8xf32> to vector<2x4x8xf32>
    %98 = arith.mulf %96, %97 : vector<2x4x8xf32>
    %99 = arith.addf %77, %98 : vector<2x4x8xf32>
    %100 = vector.broadcast %89 : vector<2x1x8xf32> to vector<2x4x8xf32>
    %101 = vector.broadcast %95 : vector<1x4x8xf32> to vector<2x4x8xf32>
    %102 = arith.mulf %100, %101 : vector<2x4x8xf32>
    %103 = arith.subf %99, %102 : vector<2x4x8xf32>
    %104 = vector.broadcast %87 : vector<2x1x8xf32> to vector<2x4x8xf32>
    %105 = vector.broadcast %95 : vector<1x4x8xf32> to vector<2x4x8xf32>
    %106 = arith.mulf %104, %105 : vector<2x4x8xf32>
    %107 = arith.addf %85, %106 : vector<2x4x8xf32>
    %108 = vector.broadcast %89 : vector<2x1x8xf32> to vector<2x4x8xf32>
    %109 = vector.broadcast %92 : vector<1x4x8xf32> to vector<2x4x8xf32>
    %110 = arith.mulf %108, %109 : vector<2x4x8xf32>
    %111 = arith.addf %107, %110 : vector<2x4x8xf32>
    %112 = arith.mulf %103, %103 : vector<2x4x8xf32>
    %113 = arith.mulf %111, %111 : vector<2x4x8xf32>
    %114 = arith.addf %112, %113 : vector<2x4x8xf32>
    %115 = math.sqrt %114 : vector<2x4x8xf32>
    %cst_8 = arith.constant 0.000000e+00 : f32
    %116 = vector.broadcast %cst_8 : f32 to vector<2x4x8xf32>
    %117 = arith.cmpf oeq, %103, %116 : vector<2x4x8xf32>
    %cst_9 = arith.constant 1.000000e+00 : f32
    %118 = vector.broadcast %cst_9 : f32 to vector<2x4x8xf32>
    %119 = arith.select %117, %118, %103 : vector<2x4x8xi1>, vector<2x4x8xf32>
    %120 = tpu.reciprocal %119 {approx = true} : vector<2x4x8xf32> -> vector<2x4x8xf32>
    %121 = arith.mulf %111, %120 : vector<2x4x8xf32>
    %cst_10 = arith.constant 0.000000e+00 : f32
    %122 = vector.broadcast %cst_10 : f32 to vector<2x4x8xf32>
    %123 = arith.cmpf ogt, %121, %122 : vector<2x4x8xf32>
    %cst_11 = arith.constant 0.000000e+00 : f32
    %124 = vector.broadcast %cst_11 : f32 to vector<2x4x8xf32>
    %125 = arith.cmpf olt, %121, %124 : vector<2x4x8xf32>
    %cst_12 = arith.constant -1.000000e+00 : f32
    %cst_13 = arith.constant 0.000000e+00 : f32
    %126 = vector.broadcast %cst_12 : f32 to vector<2x4x8xf32>
    %127 = vector.broadcast %cst_13 : f32 to vector<2x4x8xf32>
    %128 = arith.select %125, %126, %127 : vector<2x4x8xi1>, vector<2x4x8xf32>
    %cst_14 = arith.constant 1.000000e+00 : f32
    %129 = vector.broadcast %cst_14 : f32 to vector<2x4x8xf32>
    %130 = arith.select %123, %129, %128 : vector<2x4x8xi1>, vector<2x4x8xf32>
    %131 = math.absf %121 : vector<2x4x8xf32>
    %cst_15 = arith.constant 2.41421366 : f32
    %132 = vector.broadcast %cst_15 : f32 to vector<2x4x8xf32>
    %133 = arith.cmpf ogt, %131, %132 : vector<2x4x8xf32>
    %cst_16 = arith.constant 0.414213568 : f32
    %134 = vector.broadcast %cst_16 : f32 to vector<2x4x8xf32>
    %135 = arith.cmpf ogt, %131, %134 : vector<2x4x8xf32>
    %cst_17 = arith.constant 0.000000e+00 : f32
    %136 = vector.broadcast %cst_17 : f32 to vector<2x4x8xf32>
    %137 = arith.cmpf oeq, %131, %136 : vector<2x4x8xf32>
    %cst_18 = arith.constant 1.000000e+00 : f32
    %138 = vector.broadcast %cst_18 : f32 to vector<2x4x8xf32>
    %139 = arith.select %137, %138, %131 : vector<2x4x8xi1>, vector<2x4x8xf32>
    %140 = tpu.reciprocal %139 {approx = true} : vector<2x4x8xf32> -> vector<2x4x8xf32>
    %cst_19 = arith.constant 1.000000e+00 : f32
    %141 = vector.broadcast %cst_19 : f32 to vector<2x4x8xf32>
    %142 = arith.addf %131, %141 : vector<2x4x8xf32>
    %143 = tpu.reciprocal %142 {approx = true} : vector<2x4x8xf32> -> vector<2x4x8xf32>
    %cst_20 = arith.constant 0.000000e+00 : f32
    %144 = vector.broadcast %cst_20 : f32 to vector<2x4x8xf32>
    %145 = arith.subf %144, %140 : vector<2x4x8xf32>
    %cst_21 = arith.constant 1.000000e+00 : f32
    %146 = vector.broadcast %cst_21 : f32 to vector<2x4x8xf32>
    %147 = arith.subf %131, %146 : vector<2x4x8xf32>
    %148 = arith.mulf %147, %143 : vector<2x4x8xf32>
    %149 = arith.select %135, %148, %131 : vector<2x4x8xi1>, vector<2x4x8xf32>
    %150 = arith.select %133, %145, %149 : vector<2x4x8xi1>, vector<2x4x8xf32>
    %cst_22 = arith.constant 0.785398185 : f32
    %cst_23 = arith.constant 0.000000e+00 : f32
    %151 = vector.broadcast %cst_22 : f32 to vector<2x4x8xf32>
    %152 = vector.broadcast %cst_23 : f32 to vector<2x4x8xf32>
    %153 = arith.select %135, %151, %152 : vector<2x4x8xi1>, vector<2x4x8xf32>
    %cst_24 = arith.constant 1.57079637 : f32
    %154 = vector.broadcast %cst_24 : f32 to vector<2x4x8xf32>
    %155 = arith.select %133, %154, %153 : vector<2x4x8xi1>, vector<2x4x8xf32>
    %156 = arith.mulf %150, %150 : vector<2x4x8xf32>
    %cst_25 = arith.constant 0.0805374458 : f32
    %157 = vector.broadcast %cst_25 : f32 to vector<2x4x8xf32>
    %158 = arith.mulf %157, %156 : vector<2x4x8xf32>
    %cst_26 = arith.constant 0.138776854 : f32
    %159 = vector.broadcast %cst_26 : f32 to vector<2x4x8xf32>
    %160 = arith.subf %158, %159 : vector<2x4x8xf32>
    %161 = arith.mulf %160, %156 : vector<2x4x8xf32>
    %cst_27 = arith.constant 0.199777111 : f32
    %162 = vector.broadcast %cst_27 : f32 to vector<2x4x8xf32>
    %163 = arith.addf %161, %162 : vector<2x4x8xf32>
    %164 = arith.mulf %163, %156 : vector<2x4x8xf32>
    %cst_28 = arith.constant 0.333329499 : f32
    %165 = vector.broadcast %cst_28 : f32 to vector<2x4x8xf32>
    %166 = arith.subf %164, %165 : vector<2x4x8xf32>
    %167 = arith.mulf %166, %156 : vector<2x4x8xf32>
    %168 = arith.mulf %167, %150 : vector<2x4x8xf32>
    %169 = arith.addf %168, %150 : vector<2x4x8xf32>
    %170 = arith.addf %169, %155 : vector<2x4x8xf32>
    %171 = arith.mulf %130, %170 : vector<2x4x8xf32>
    %cst_29 = arith.constant 0.000000e+00 : f32
    %172 = vector.broadcast %cst_29 : f32 to vector<2x4x8xf32>
    %173 = arith.cmpf ogt, %103, %172 : vector<2x4x8xf32>
    %cst_30 = arith.constant 0.000000e+00 : f32
    %174 = vector.broadcast %cst_30 : f32 to vector<2x4x8xf32>
    %175 = arith.cmpf oge, %111, %174 : vector<2x4x8xf32>
    %cst_31 = arith.constant 3.14159274 : f32
    %176 = vector.broadcast %cst_31 : f32 to vector<2x4x8xf32>
    %177 = arith.addf %171, %176 : vector<2x4x8xf32>
    %cst_32 = arith.constant 3.14159274 : f32
    %178 = vector.broadcast %cst_32 : f32 to vector<2x4x8xf32>
    %179 = arith.subf %171, %178 : vector<2x4x8xf32>
    %180 = arith.select %175, %177, %179 : vector<2x4x8xi1>, vector<2x4x8xf32>
    %181 = arith.select %173, %171, %180 : vector<2x4x8xi1>, vector<2x4x8xf32>
    %cst_33 = arith.constant 0.000000e+00 : f32
    %182 = vector.broadcast %cst_33 : f32 to vector<2x4x8xf32>
    %183 = arith.cmpf oeq, %103, %182 : vector<2x4x8xf32>
    %cst_34 = arith.constant 0.000000e+00 : f32
    %184 = vector.broadcast %cst_34 : f32 to vector<2x4x8xf32>
    %185 = arith.cmpf ogt, %111, %184 : vector<2x4x8xf32>
    %cst_35 = arith.constant 3.14159274 : f32
    %cst_36 = arith.constant 2.000000e+00 : f32
    %186 = arith.divf %cst_35, %cst_36 : f32
    %cst_37 = arith.constant 0.000000e+00 : f32
    %187 = vector.broadcast %cst_37 : f32 to vector<2x4x8xf32>
    %188 = arith.cmpf olt, %111, %187 : vector<2x4x8xf32>
    %cst_38 = arith.constant 0.000000e+00 : f32
    %cst_39 = arith.constant 3.14159274 : f32
    %189 = arith.subf %cst_38, %cst_39 : f32
    %cst_40 = arith.constant 2.000000e+00 : f32
    %190 = arith.divf %189, %cst_40 : f32
    %cst_41 = arith.constant 0.000000e+00 : f32
    %191 = vector.broadcast %190 : f32 to vector<2x4x8xf32>
    %192 = vector.broadcast %cst_41 : f32 to vector<2x4x8xf32>
    %193 = arith.select %188, %191, %192 : vector<2x4x8xi1>, vector<2x4x8xf32>
    %194 = vector.broadcast %186 : f32 to vector<2x4x8xf32>
    %195 = arith.select %185, %194, %193 : vector<2x4x8xi1>, vector<2x4x8xf32>
    %196 = arith.select %183, %195, %181 : vector<2x4x8xi1>, vector<2x4x8xf32>
    %c0_42 = arith.constant 0 : index
    %c0_43 = arith.constant 0 : index
    %197 = vector.load %arg3[%c0_42, %c0_43] : memref<4x18xf32, #tpu.memory_space<vmem>>, vector<4x18xf32>
    %198 = vector.extract_strided_slice %197 {offsets = [0, 10], sizes = [4, 4], strides = [1, 1]} : vector<4x18xf32> to vector<4x4xf32>
    %199 = vector.extract_strided_slice %197 {offsets = [0, 14], sizes = [4, 4], strides = [1, 1]} : vector<4x18xf32> to vector<4x4xf32>
    %200 = vector.extract_strided_slice %197 {offsets = [0, 0], sizes = [4, 1], strides = [1, 1]} : vector<4x18xf32> to vector<4x1xf32>
    %201 = vector.shape_cast %200 : vector<4x1xf32> to vector<1x4x1xf32>
    %202 = vector.extract_strided_slice %197 {offsets = [0, 1], sizes = [4, 1], strides = [1, 1]} : vector<4x18xf32> to vector<4x1xf32>
    %203 = vector.shape_cast %202 : vector<4x1xf32> to vector<1x4x1xf32>
    %cst_44 = arith.constant dense<0.000000e+00> : vector<4xf32>
    %204 = vector.multi_reduction <add>, %115, %cst_44 [0, 2] : vector<2x4x8xf32> to vector<4xf32>
    %205 = vector.shape_cast %204 : vector<4xf32> to vector<1x4x1xf32>
    %cst_45 = arith.constant 1.600000e+01 : f32
    %206 = vector.broadcast %cst_45 : f32 to vector<1x4x1xf32>
    %207 = arith.divf %205, %206 : vector<1x4x1xf32>
    %208 = arith.mulf %115, %115 : vector<2x4x8xf32>
    %cst_46 = arith.constant dense<0.000000e+00> : vector<4xf32>
    %209 = vector.multi_reduction <add>, %208, %cst_46 [0, 2] : vector<2x4x8xf32> to vector<4xf32>
    %210 = vector.shape_cast %209 : vector<4xf32> to vector<1x4x1xf32>
    %cst_47 = arith.constant 1.600000e+01 : f32
    %211 = vector.broadcast %cst_47 : f32 to vector<1x4x1xf32>
    %212 = arith.divf %210, %211 : vector<1x4x1xf32>
    %213 = arith.mulf %207, %207 : vector<1x4x1xf32>
    %214 = arith.subf %212, %213 : vector<1x4x1xf32>
    %215 = vector.broadcast %207 : vector<1x4x1xf32> to vector<2x4x8xf32>
    %216 = arith.subf %115, %215 : vector<2x4x8xf32>
    %cst_48 = arith.constant 9.99999974E-6 : f32
    %217 = vector.broadcast %cst_48 : f32 to vector<1x4x1xf32>
    %218 = arith.addf %214, %217 : vector<1x4x1xf32>
    %219 = math.rsqrt %218 : vector<1x4x1xf32>
    %220 = arith.mulf %219, %201 : vector<1x4x1xf32>
    %221 = vector.broadcast %220 : vector<1x4x1xf32> to vector<2x4x8xf32>
    %222 = arith.mulf %216, %221 : vector<2x4x8xf32>
    %223 = vector.broadcast %203 : vector<1x4x1xf32> to vector<2x4x8xf32>
    %224 = arith.addf %222, %223 : vector<2x4x8xf32>
    %225 = vector.extract_strided_slice %197 {offsets = [0, 2], sizes = [4, 1], strides = [1, 1]} : vector<4x18xf32> to vector<4x1xf32>
    %226 = vector.shape_cast %225 : vector<4x1xf32> to vector<1x4x1xf32>
    %227 = vector.extract_strided_slice %197 {offsets = [0, 3], sizes = [4, 1], strides = [1, 1]} : vector<4x18xf32> to vector<4x1xf32>
    %228 = vector.shape_cast %227 : vector<4x1xf32> to vector<1x4x1xf32>
    %cst_49 = arith.constant dense<0.000000e+00> : vector<4xf32>
    %229 = vector.multi_reduction <add>, %196, %cst_49 [0, 2] : vector<2x4x8xf32> to vector<4xf32>
    %230 = vector.shape_cast %229 : vector<4xf32> to vector<1x4x1xf32>
    %cst_50 = arith.constant 1.600000e+01 : f32
    %231 = vector.broadcast %cst_50 : f32 to vector<1x4x1xf32>
    %232 = arith.divf %230, %231 : vector<1x4x1xf32>
    %233 = arith.mulf %196, %196 : vector<2x4x8xf32>
    %cst_51 = arith.constant dense<0.000000e+00> : vector<4xf32>
    %234 = vector.multi_reduction <add>, %233, %cst_51 [0, 2] : vector<2x4x8xf32> to vector<4xf32>
    %235 = vector.shape_cast %234 : vector<4xf32> to vector<1x4x1xf32>
    %cst_52 = arith.constant 1.600000e+01 : f32
    %236 = vector.broadcast %cst_52 : f32 to vector<1x4x1xf32>
    %237 = arith.divf %235, %236 : vector<1x4x1xf32>
    %238 = arith.mulf %232, %232 : vector<1x4x1xf32>
    %239 = arith.subf %237, %238 : vector<1x4x1xf32>
    %240 = vector.broadcast %232 : vector<1x4x1xf32> to vector<2x4x8xf32>
    %241 = arith.subf %196, %240 : vector<2x4x8xf32>
    %cst_53 = arith.constant 9.99999974E-6 : f32
    %242 = vector.broadcast %cst_53 : f32 to vector<1x4x1xf32>
    %243 = arith.addf %239, %242 : vector<1x4x1xf32>
    %244 = math.rsqrt %243 : vector<1x4x1xf32>
    %245 = arith.mulf %244, %226 : vector<1x4x1xf32>
    %246 = vector.broadcast %245 : vector<1x4x1xf32> to vector<2x4x8xf32>
    %247 = arith.mulf %241, %246 : vector<2x4x8xf32>
    %248 = vector.broadcast %228 : vector<1x4x1xf32> to vector<2x4x8xf32>
    %249 = arith.addf %247, %248 : vector<2x4x8xf32>
    %250 = vector.extract_strided_slice %197 {offsets = [0, 4], sizes = [4, 1], strides = [1, 1]} : vector<4x18xf32> to vector<4x1xf32>
    %251 = vector.shape_cast %250 : vector<4x1xf32> to vector<1x4x1xf32>
    %cst_54 = arith.constant 0.000000e+00 : f32
    %252 = vector.broadcast %cst_54 : f32 to vector<2x4x8xf32>
    %253 = vector.extract_strided_slice %224 {offsets = [0, 0, 0], sizes = [2, 1, 8], strides = [1, 1, 1]} : vector<2x4x8xf32> to vector<2x1x8xf32>
    %254 = vector.extract_strided_slice %198 {offsets = [0, 0], sizes = [4, 1], strides = [1, 1]} : vector<4x4xf32> to vector<4x1xf32>
    %255 = vector.shape_cast %254 : vector<4x1xf32> to vector<1x4x1xf32>
    %256 = vector.broadcast %253 : vector<2x1x8xf32> to vector<2x4x8xf32>
    %257 = vector.broadcast %255 : vector<1x4x1xf32> to vector<2x4x8xf32>
    %258 = arith.mulf %256, %257 : vector<2x4x8xf32>
    %259 = arith.addf %252, %258 : vector<2x4x8xf32>
    %260 = vector.extract_strided_slice %224 {offsets = [0, 1, 0], sizes = [2, 1, 8], strides = [1, 1, 1]} : vector<2x4x8xf32> to vector<2x1x8xf32>
    %261 = vector.extract_strided_slice %198 {offsets = [0, 1], sizes = [4, 1], strides = [1, 1]} : vector<4x4xf32> to vector<4x1xf32>
    %262 = vector.shape_cast %261 : vector<4x1xf32> to vector<1x4x1xf32>
    %263 = vector.broadcast %260 : vector<2x1x8xf32> to vector<2x4x8xf32>
    %264 = vector.broadcast %262 : vector<1x4x1xf32> to vector<2x4x8xf32>
    %265 = arith.mulf %263, %264 : vector<2x4x8xf32>
    %266 = arith.addf %259, %265 : vector<2x4x8xf32>
    %267 = vector.extract_strided_slice %224 {offsets = [0, 2, 0], sizes = [2, 1, 8], strides = [1, 1, 1]} : vector<2x4x8xf32> to vector<2x1x8xf32>
    %268 = vector.extract_strided_slice %198 {offsets = [0, 2], sizes = [4, 1], strides = [1, 1]} : vector<4x4xf32> to vector<4x1xf32>
    %269 = vector.shape_cast %268 : vector<4x1xf32> to vector<1x4x1xf32>
    %270 = vector.broadcast %267 : vector<2x1x8xf32> to vector<2x4x8xf32>
    %271 = vector.broadcast %269 : vector<1x4x1xf32> to vector<2x4x8xf32>
    %272 = arith.mulf %270, %271 : vector<2x4x8xf32>
    %273 = arith.addf %266, %272 : vector<2x4x8xf32>
    %274 = vector.extract_strided_slice %224 {offsets = [0, 3, 0], sizes = [2, 1, 8], strides = [1, 1, 1]} : vector<2x4x8xf32> to vector<2x1x8xf32>
    %275 = vector.extract_strided_slice %198 {offsets = [0, 3], sizes = [4, 1], strides = [1, 1]} : vector<4x4xf32> to vector<4x1xf32>
    %276 = vector.shape_cast %275 : vector<4x1xf32> to vector<1x4x1xf32>
    %277 = vector.broadcast %274 : vector<2x1x8xf32> to vector<2x4x8xf32>
    %278 = vector.broadcast %276 : vector<1x4x1xf32> to vector<2x4x8xf32>
    %279 = arith.mulf %277, %278 : vector<2x4x8xf32>
    %280 = arith.addf %273, %279 : vector<2x4x8xf32>
    %281 = vector.broadcast %251 : vector<1x4x1xf32> to vector<2x4x8xf32>
    %282 = arith.addf %280, %281 : vector<2x4x8xf32>
    %283 = vector.extract_strided_slice %197 {offsets = [0, 5], sizes = [4, 1], strides = [1, 1]} : vector<4x18xf32> to vector<4x1xf32>
    %284 = vector.shape_cast %283 : vector<4x1xf32> to vector<1x4x1xf32>
    %285 = vector.extract_strided_slice %197 {offsets = [0, 6], sizes = [4, 1], strides = [1, 1]} : vector<4x18xf32> to vector<4x1xf32>
    %286 = vector.shape_cast %285 : vector<4x1xf32> to vector<1x4x1xf32>
    %cst_55 = arith.constant dense<0.000000e+00> : vector<4xf32>
    %287 = vector.multi_reduction <add>, %282, %cst_55 [0, 2] : vector<2x4x8xf32> to vector<4xf32>
    %288 = vector.shape_cast %287 : vector<4xf32> to vector<1x4x1xf32>
    %cst_56 = arith.constant 1.600000e+01 : f32
    %289 = vector.broadcast %cst_56 : f32 to vector<1x4x1xf32>
    %290 = arith.divf %288, %289 : vector<1x4x1xf32>
    %291 = arith.mulf %282, %282 : vector<2x4x8xf32>
    %cst_57 = arith.constant dense<0.000000e+00> : vector<4xf32>
    %292 = vector.multi_reduction <add>, %291, %cst_57 [0, 2] : vector<2x4x8xf32> to vector<4xf32>
    %293 = vector.shape_cast %292 : vector<4xf32> to vector<1x4x1xf32>
    %cst_58 = arith.constant 1.600000e+01 : f32
    %294 = vector.broadcast %cst_58 : f32 to vector<1x4x1xf32>
    %295 = arith.divf %293, %294 : vector<1x4x1xf32>
    %296 = arith.mulf %290, %290 : vector<1x4x1xf32>
    %297 = arith.subf %295, %296 : vector<1x4x1xf32>
    %298 = vector.broadcast %290 : vector<1x4x1xf32> to vector<2x4x8xf32>
    %299 = arith.subf %282, %298 : vector<2x4x8xf32>
    %cst_59 = arith.constant 9.99999974E-6 : f32
    %300 = vector.broadcast %cst_59 : f32 to vector<1x4x1xf32>
    %301 = arith.addf %297, %300 : vector<1x4x1xf32>
    %302 = math.rsqrt %301 : vector<1x4x1xf32>
    %303 = arith.mulf %302, %284 : vector<1x4x1xf32>
    %304 = vector.broadcast %303 : vector<1x4x1xf32> to vector<2x4x8xf32>
    %305 = arith.mulf %299, %304 : vector<2x4x8xf32>
    %306 = vector.broadcast %286 : vector<1x4x1xf32> to vector<2x4x8xf32>
    %307 = arith.addf %305, %306 : vector<2x4x8xf32>
    %cst_60 = arith.constant 0.000000e+00 : f32
    %308 = vector.broadcast %cst_60 : f32 to vector<2x4x8xf32>
    %309 = arith.maximumf %307, %308 : vector<2x4x8xf32>
    %310 = vector.extract_strided_slice %197 {offsets = [0, 7], sizes = [4, 1], strides = [1, 1]} : vector<4x18xf32> to vector<4x1xf32>
    %311 = vector.shape_cast %310 : vector<4x1xf32> to vector<1x4x1xf32>
    %cst_61 = arith.constant 0.000000e+00 : f32
    %312 = vector.broadcast %cst_61 : f32 to vector<2x4x8xf32>
    %313 = vector.extract_strided_slice %249 {offsets = [0, 0, 0], sizes = [2, 1, 8], strides = [1, 1, 1]} : vector<2x4x8xf32> to vector<2x1x8xf32>
    %314 = vector.extract_strided_slice %199 {offsets = [0, 0], sizes = [4, 1], strides = [1, 1]} : vector<4x4xf32> to vector<4x1xf32>
    %315 = vector.shape_cast %314 : vector<4x1xf32> to vector<1x4x1xf32>
    %316 = vector.broadcast %313 : vector<2x1x8xf32> to vector<2x4x8xf32>
    %317 = vector.broadcast %315 : vector<1x4x1xf32> to vector<2x4x8xf32>
    %318 = arith.mulf %316, %317 : vector<2x4x8xf32>
    %319 = arith.addf %312, %318 : vector<2x4x8xf32>
    %320 = vector.extract_strided_slice %249 {offsets = [0, 1, 0], sizes = [2, 1, 8], strides = [1, 1, 1]} : vector<2x4x8xf32> to vector<2x1x8xf32>
    %321 = vector.extract_strided_slice %199 {offsets = [0, 1], sizes = [4, 1], strides = [1, 1]} : vector<4x4xf32> to vector<4x1xf32>
    %322 = vector.shape_cast %321 : vector<4x1xf32> to vector<1x4x1xf32>
    %323 = vector.broadcast %320 : vector<2x1x8xf32> to vector<2x4x8xf32>
    %324 = vector.broadcast %322 : vector<1x4x1xf32> to vector<2x4x8xf32>
    %325 = arith.mulf %323, %324 : vector<2x4x8xf32>
    %326 = arith.addf %319, %325 : vector<2x4x8xf32>
    %327 = vector.extract_strided_slice %249 {offsets = [0, 2, 0], sizes = [2, 1, 8], strides = [1, 1, 1]} : vector<2x4x8xf32> to vector<2x1x8xf32>
    %328 = vector.extract_strided_slice %199 {offsets = [0, 2], sizes = [4, 1], strides = [1, 1]} : vector<4x4xf32> to vector<4x1xf32>
    %329 = vector.shape_cast %328 : vector<4x1xf32> to vector<1x4x1xf32>
    %330 = vector.broadcast %327 : vector<2x1x8xf32> to vector<2x4x8xf32>
    %331 = vector.broadcast %329 : vector<1x4x1xf32> to vector<2x4x8xf32>
    %332 = arith.mulf %330, %331 : vector<2x4x8xf32>
    %333 = arith.addf %326, %332 : vector<2x4x8xf32>
    %334 = vector.extract_strided_slice %249 {offsets = [0, 3, 0], sizes = [2, 1, 8], strides = [1, 1, 1]} : vector<2x4x8xf32> to vector<2x1x8xf32>
    %335 = vector.extract_strided_slice %199 {offsets = [0, 3], sizes = [4, 1], strides = [1, 1]} : vector<4x4xf32> to vector<4x1xf32>
    %336 = vector.shape_cast %335 : vector<4x1xf32> to vector<1x4x1xf32>
    %337 = vector.broadcast %334 : vector<2x1x8xf32> to vector<2x4x8xf32>
    %338 = vector.broadcast %336 : vector<1x4x1xf32> to vector<2x4x8xf32>
    %339 = arith.mulf %337, %338 : vector<2x4x8xf32>
    %340 = arith.addf %333, %339 : vector<2x4x8xf32>
    %341 = vector.broadcast %311 : vector<1x4x1xf32> to vector<2x4x8xf32>
    %342 = arith.addf %340, %341 : vector<2x4x8xf32>
    %343 = vector.extract_strided_slice %197 {offsets = [0, 8], sizes = [4, 1], strides = [1, 1]} : vector<4x18xf32> to vector<4x1xf32>
    %344 = vector.shape_cast %343 : vector<4x1xf32> to vector<1x4x1xf32>
    %345 = vector.extract_strided_slice %197 {offsets = [0, 9], sizes = [4, 1], strides = [1, 1]} : vector<4x18xf32> to vector<4x1xf32>
    %346 = vector.shape_cast %345 : vector<4x1xf32> to vector<1x4x1xf32>
    %cst_62 = arith.constant dense<0.000000e+00> : vector<4xf32>
    %347 = vector.multi_reduction <add>, %342, %cst_62 [0, 2] : vector<2x4x8xf32> to vector<4xf32>
    %348 = vector.shape_cast %347 : vector<4xf32> to vector<1x4x1xf32>
    %cst_63 = arith.constant 1.600000e+01 : f32
    %349 = vector.broadcast %cst_63 : f32 to vector<1x4x1xf32>
    %350 = arith.divf %348, %349 : vector<1x4x1xf32>
    %351 = arith.mulf %342, %342 : vector<2x4x8xf32>
    %cst_64 = arith.constant dense<0.000000e+00> : vector<4xf32>
    %352 = vector.multi_reduction <add>, %351, %cst_64 [0, 2] : vector<2x4x8xf32> to vector<4xf32>
    %353 = vector.shape_cast %352 : vector<4xf32> to vector<1x4x1xf32>
    %cst_65 = arith.constant 1.600000e+01 : f32
    %354 = vector.broadcast %cst_65 : f32 to vector<1x4x1xf32>
    %355 = arith.divf %353, %354 : vector<1x4x1xf32>
    %356 = arith.mulf %350, %350 : vector<1x4x1xf32>
    %357 = arith.subf %355, %356 : vector<1x4x1xf32>
    %358 = vector.broadcast %350 : vector<1x4x1xf32> to vector<2x4x8xf32>
    %359 = arith.subf %342, %358 : vector<2x4x8xf32>
    %cst_66 = arith.constant 9.99999974E-6 : f32
    %360 = vector.broadcast %cst_66 : f32 to vector<1x4x1xf32>
    %361 = arith.addf %357, %360 : vector<1x4x1xf32>
    %362 = math.rsqrt %361 : vector<1x4x1xf32>
    %363 = arith.mulf %362, %344 : vector<1x4x1xf32>
    %364 = vector.broadcast %363 : vector<1x4x1xf32> to vector<2x4x8xf32>
    %365 = arith.mulf %359, %364 : vector<2x4x8xf32>
    %366 = vector.broadcast %346 : vector<1x4x1xf32> to vector<2x4x8xf32>
    %367 = arith.addf %365, %366 : vector<2x4x8xf32>
    %368 = math.tanh %367 : vector<2x4x8xf32>
    %369 = arith.addf %309, %368 : vector<2x4x8xf32>
    %370 = vector.shape_cast %369 : vector<2x4x8xf32> to vector<8x8xf32>
    %371 = vector.shape_cast %103 : vector<2x4x8xf32> to vector<8x8xf32>
    %372 = vector.shape_cast %111 : vector<2x4x8xf32> to vector<8x8xf32>
    %373 = tpu.iota {dimensions = array<i32: 1>} : vector<8x128xi32>
    %374 = tpu.iota {dimensions = array<i32: 0>} : vector<8x128xi32>
    %375 = arith.cmpi eq, %373, %374 : vector<8x128xi32>
    %cst_67 = arith.constant 1.000000e+00 : f32
    %cst_68 = arith.constant 0.000000e+00 : f32
    %376 = vector.broadcast %cst_67 : f32 to vector<8x128xf32>
    %377 = vector.broadcast %cst_68 : f32 to vector<8x128xf32>
    %378 = arith.select %375, %376, %377 : vector<8x128xi1>, vector<8x128xf32>
    %c8_i32 = arith.constant 8 : i32
    %379 = vector.broadcast %c8_i32 : i32 to vector<8x128xi32>
    %380 = arith.addi %374, %379 : vector<8x128xi32>
    %381 = arith.cmpi eq, %373, %380 : vector<8x128xi32>
    %cst_69 = arith.constant 1.000000e+00 : f32
    %cst_70 = arith.constant 0.000000e+00 : f32
    %382 = vector.broadcast %cst_69 : f32 to vector<8x128xf32>
    %383 = vector.broadcast %cst_70 : f32 to vector<8x128xf32>
    %384 = arith.select %381, %382, %383 : vector<8x128xi1>, vector<8x128xf32>
    %c16_i32 = arith.constant 16 : i32
    %385 = vector.broadcast %c16_i32 : i32 to vector<8x128xi32>
    %386 = arith.addi %374, %385 : vector<8x128xi32>
    %387 = arith.cmpi eq, %373, %386 : vector<8x128xi32>
    %cst_71 = arith.constant 1.000000e+00 : f32
    %cst_72 = arith.constant 0.000000e+00 : f32
    %388 = vector.broadcast %cst_71 : f32 to vector<8x128xf32>
    %389 = vector.broadcast %cst_72 : f32 to vector<8x128xf32>
    %390 = arith.select %387, %388, %389 : vector<8x128xi1>, vector<8x128xf32>
    %cst_73 = arith.constant dense<0.000000e+00> : vector<8x128xf32>
    %391 = tpu.matmul %370, %378, %cst_73 {dimension_numbers = #tpu.dot_dimension_numbers<[1], [0], [0], [1], [0, 0, 1, 1], [], []>} : vector<8x8xf32>, vector<8x128xf32>, vector<8x128xf32> -> vector<8x128xf32>
    %cst_74 = arith.constant dense<0.000000e+00> : vector<8x128xf32>
    %392 = tpu.matmul %371, %384, %cst_74 {dimension_numbers = #tpu.dot_dimension_numbers<[1], [0], [0], [1], [0, 0, 1, 1], [], []>} : vector<8x8xf32>, vector<8x128xf32>, vector<8x128xf32> -> vector<8x128xf32>
    %393 = arith.addf %391, %392 : vector<8x128xf32>
    %cst_75 = arith.constant dense<0.000000e+00> : vector<8x128xf32>
    %394 = tpu.matmul %372, %390, %cst_75 {dimension_numbers = #tpu.dot_dimension_numbers<[1], [0], [0], [1], [0, 0, 1, 1], [], []>} : vector<8x8xf32>, vector<8x128xf32>, vector<8x128xf32> -> vector<8x128xf32>
    %395 = arith.addf %393, %394 : vector<8x128xf32>
    %c0_76 = arith.constant 0 : index
    %c0_77 = arith.constant 0 : index
    %396 = vector.load %arg4[%c0_76, %c0_77] : memref<8x128xf32, #tpu.memory_space<vmem>>, vector<8x128xf32>
    tpu.vector_store %arg4[%c0_76, %c0_77], %395 {strides = array<i32>} : memref<8x128xf32, #tpu.memory_space<vmem>>, vector<8x128xf32>,
    return
  }
}

</mosaic_0001>

<bundles_post_ra>
// kernel: custom-call
= control target key start
LH: loop header
LB: loop body
LE: loop exit
PB: predicated region body
PF: predicated region fallthrough
CT: control target
= control target key end

     0   :  { %s126_s0 = inlined_call_operand.vmem [shape: f32[2,4,9], index: 0, kind: input, shape index: {}]   ;;  %s127_s1 = inlined_call_operand.vmem [shape: f32[2,4,9], index: 1, kind: input, shape index: {}]   ;;  %s128_s2 = inlined_call_operand.hbm [shape: c64[2,4,9], index: 2, kind: output, shape index: {}]  }
   0x1   :  { %s87_s11 = scalar_lea.hbm %s128_s2, 128 }
   0x2   :  { %4 = vsyncpa [#allocation0], 0  ;;  %s5_s14 = sshll.u32 %s126_s0, 4  ;;  %s6_s14 = int_to_ptr.vmem [resolvable:$true] %s5_s14 }
   0x3   :  { %s18_s15 = scalar_lea.vmem %s6_s14, 128  ;;  %p23_p1 = scmp.lt.s32.totalorder %s6_s14, %s6_s14 }
   0x4   :  { %p19_p0 = scmp.ne.s32.totalorder %s6_s14, %s18_s15  ;;  %p24_p2 = scmp.lt.s32.totalorder %s18_s15, %s18_s15 }
   0x6   :  { %p25_p3 = por %p24_p2, %p23_p1 }
   0x8   :  { %p26_p4 = pnand %p25_p3, %p19_p0 }
   0xa   :  { %29 = shalt.err (!%p26_p4)  }
   0xb   :  { %p31_p5 = scmp.ne.s32.totalorder %s128_s2, %s87_s11  ;;  %s32_s0 = scalar_lea.hbm %s128_s2, 256 }
   0xc   :  { %p33_p6 = scmp.lt.u32.totalorder %s32_s0, %s87_s11  ;;  %p34_p7 = scmp.lt.u32.totalorder %s87_s11, %s128_s2 }
   0xe   :  { %p35_p8 = por %p34_p7, %p33_p6 }
  0x10   :  { %p36_p9 = pnand %p35_p8, %p31_p5 }
  0x12   :  { %39 = shalt.err (!%p36_p9)  }
  0x13   :  { %8 = dma.vmem_to_hbm [thread:$0]  %s6_s14, 128, %s128_s2, [#allocation0] }
  0x14   :  { %65 = dma.done.wait [#allocation0], 128  }
  0x15   :  { %66 = vsyncadd [#allocation0], 4294967168 }
  0x16   :  { %10 = vsyncpa [#allocation0], 1 }
  0x17   :  { %11 = vsyncpa [#allocation1], 0  ;;  %s12_s28 = sshll.u32 %s127_s1, 4  ;;  %s13_s28 = int_to_ptr.vmem [resolvable:$true] %s12_s28 }
  0x18   :  { %s40_s29 = scalar_lea.vmem %s13_s28, 128  ;;  %p45_p11 = scmp.lt.s32.totalorder %s13_s28, %s13_s28 }
  0x19   :  { %p41_p10 = scmp.ne.s32.totalorder %s13_s28, %s40_s29  ;;  %p46_p12 = scmp.lt.s32.totalorder %s40_s29, %s40_s29 }
  0x1b   :  { %p47_p13 = por %p46_p12, %p45_p11 }
  0x1d   :  { %p48_p0 = pnand %p47_p13, %p41_p10 }
  0x1f   :  { %51 = shalt.err (!%p48_p0)  }
  0x20   :  { %p53_p1 = scmp.ne.s32.totalorder %s87_s11, %s32_s0  ;;  %p56_p2 = scmp.lt.u32.totalorder %s32_s0, %s32_s0 }
  0x22   :  { %p57_p3 = por %p56_p2, %p34_p7 }
  0x24   :  { %p59_p4 = por %p57_p3, %p33_p6 }
  0x26   :  { %p60_p5 = pnand %p59_p4, %p53_p1 }
  0x28   :  { %63 = shalt.err (!%p60_p5)  }
  0x29   :  { %15 = dma.vmem_to_hbm [thread:$0]  %s13_s28, 128, %s87_s11, [#allocation1] }
  0x2a   :  { %67 = dma.done.wait [#allocation1], 128  }
  0x2b   :  { %68 = vsyncadd [#allocation1], 4294967168 }
  0x2c   :  { %17 = vsyncpa [#allocation1], 1 }

// kernel: spectral_conv1d_forward.1
= control target key start
LH: loop header
LB: loop body
LE: loop exit
PB: predicated region body
PF: predicated region fallthrough
CT: control target
= control target key end

     0   :  { %v1101_v0 = vmov 0.0|0.0   ;;  %vm1102_vm0 = vmmov 0   ;;  %v1103_v3 = vmov 0.0   ;;  %vm20_vm1 = vcmask 130048   ;;  %s1490_s1 = inlined_call_operand.vmem [shape: f32[16,16], index: 1, kind: input, shape index: {}]   ;;  %s1491_s2 = inlined_call_operand.vmem [shape: f32[4,4,16], index: 2, kind: input, shape index: {}]   ;;  %s1492_s0 = inlined_call_operand.vmem [shape: f32[8,16], index: 0, kind: input, shape index: {}]   ;;  %s1493_s3 = inlined_call_operand.vmem [shape: f32[4,18], index: 3, kind: input, shape index: {}]   ;;  %s1494_s4 = inlined_call_operand.vmem [shape: f32[8,128], index: 4, kind: output, shape index: {}]  }
   0x1   :  { %1024 = vmatprep.subr.bf16.mxu0 %v1101_v0  ;;  %v18_v1 = vld [vmem:[%s1490_s1] sm:$0xff]  ;;  %v19_v2 = vld [vmem:[%s1490_s1 + $0x8] sm:$0xff]  ;;  %1006 = vmatprep.mubr.msk.f32.mxu0 %vm1102_vm0, %v1103_v3  ;;  %s1104_s1 = smov 8   ;;  %v1106_v10 = vmov 1966171168   ;;  %v102_v12 = vlaneseq  ;;  %v1107_v49 = vmov 1.0  }
   0x2   :  { %v1025_v4 = vpack.c.bf16 %v19_v2, %v18_v1  ;;  %v94_v5 = vld [vmem:[%s1491_s2] sm:$0xf]  ;;  %v1165_v6 = vld [vmem:[%s1491_s2 + $0x8] sm:$0xf]  ;;  %1014 = vmatprep.subr.mxu1 %v1103_v3  ;;  %1016 = vmatprep.mubr.msk.f32.mxu1 %vm1102_vm0, %v1103_v3  ;;  %v95_v8 = vld [vmem:[%s1491_s2 + $0x4] sm:$0xf]  ;;  %v100_v11 = vunpack.c.l.s4 %v1106_v10 }
   0x3   :  { %153 = vrot.lane.b32.xlu0 %v94_v5, %s1104_s1  ;;  %272 = vrot.lane.b32.xlu1 %v1165_v6, %s1104_s1  ;;  %v17_v7 = vld [vmem:[%s1492_s0] sm:$0xff]  ;;  %v1180_v9 = vld [vmem:[%s1491_s2 + $0xc] sm:$0xf]  ;;  %s1105_s0 = smov 120   ;;  %v1188_v14 = vshrl.u32 %v102_v12, 7  ;;  %v1214_v43 = vand.u32 127, %v102_v12 }
   0x4   :  { %1026 = vmatpush3.bf16.msra.mxu0 %v1025_v4  ;;  %v101_v13 = vunpack.c.0.s8 %v100_v11  ;;  %vm749_vm4 = vcmask 64512  }
   0x5   :  { %1009 = vmatprep.subr.mxu0 %v1103_v3  ;;  %v1192_v18 = vsub.s32 0, %v1188_v14  ;;  %v740_v44 = vadd.s32 8, %v1188_v14 }
   0x6   :  { %v104_v15 = vsub.s32 %v101_v13, %v1188_v14 }
   0x7   :  { %1007 = vmatmul.mubr.msk.f32.vlgmr.msra.gmra.mrb[0].mxu0 %vm20_vm1, %v17_v7  ;;  %202 = vrot.lane.b32.xlu0 %v95_v8, %s1104_s1  ;;  %vm741_vm2 = vcmp.eq.s32.totalorder %v1214_v43, %v740_v44 }
   0x8   :  { %321 = vrot.lane.b32.xlu1 %v1180_v9, %s1104_s1  ;;  %1011 = vmatprep.mubr.msk.f32.mxu0 %vm1102_vm0, %v1103_v3 }
   0x9   :  { %1010 = vmatpush3.msk.msra.mxu0 %vm741_vm2, %v1107_v49 }
   0xb   :  { %146 = vrot.lane.b32.xlu0 %v94_v5, %s1105_s0 }
   0xc   :  { %195 = vrot.lane.b32.xlu1 %v95_v8, %s1105_s0 }
  0x75   :  { %v154_v27 = vpop.permute.xlu0 %153  ;;  %v273_v57 = vpop.permute.xlu1 %272 }
  0x79   :  { %v203_v54 = vpop.permute.xlu0 %202 }
  0x7a   :  { %v322_v60 = vpop.permute.xlu1 %321 }
  0x7d   :  { %v147_v63 = vpop.permute.xlu0 %146 }
  0x7e   :  { %v196_v0 = vpop.permute.xlu1 %195 }
  0xda   :  { %v90_v16 = vpop.f32.mrb[0].mxu0 }
  0xdb   :  { %v105_v17 = vrot.slane %v90_v16, %v104_v15  ;;  %v217_v19 = vcombine.high %v90_v16, %v90_v16  ;;  %v1008_v20 = vpop.f32.mrb[1].mxu0 }
  0xdd   :  { %v106_v21 = vcombine.high %v105_v17, %v105_v17  ;;  %v113_v22 = vrot.slane %v105_v17, %v104_v15  ;;  %v224_v23 = vrot.slane %v217_v19, %v104_v15 }
  0xdf   :  { %v120_v24 = vrot.slane %v106_v21, %v104_v15  ;;  %v124_v25 = vrot.slane %v113_v22, %v1192_v18  ;;  %v168_v26 = vcombine.high %v113_v22, %v113_v22  ;;  %v225_v29 = vcombine.high %v224_v23, %v224_v23 }
  0xe0   :  { %v232_v32 = vrot.slane %v224_v23, %v104_v15 }
  0xe1   :  { %v169_v28 = vcombine.high %v120_v24, %v120_v24  ;;  %v1196_v30 = vrot.slane %v120_v24, %v1192_v18  ;;  %v156_v31 = vmul.f32 %v154_v27, %v124_v25  ;;  %v173_v33 = vrot.slane %v168_v26, %v1192_v18 }
  0xe2   :  { %v131_v34 = vmul.f32 %v124_v25, %v94_v5  ;;  %v239_v35 = vrot.slane %v225_v29, %v104_v15  ;;  %v1206_v38 = vrot.slane %v232_v32, %v1192_v18  ;;  %v287_v40 = vcombine.high %v232_v32, %v232_v32 }
  0xe3   :  { %160 = vrot.lane.b32.xlu1 %v156_v31, %s1105_s0  ;;  %v1201_v36 = vrot.slane %v169_v28, %v1192_v18  ;;  %v132_v37 = vmul.f32 %v1196_v30, %v94_v5  ;;  %v180_v39 = vmul.f32 %v173_v33, %v95_v8  ;;  %v157_v51 = vmul.f32 %v154_v27, %v1196_v30 }
  0xe4   :  { %137 = vrot.lane.b32.xlu0 %v131_v34, %s1105_s0  ;;  %v1212_v42 = vrot.slane %v239_v35, %v1192_v18  ;;  %v288_v45 = vcombine.high %v239_v35, %v239_v35  ;;  %v250_v46 = vmul.f32 %v1206_v38, %v1165_v6  ;;  %v1222_v47 = vrot.slane %v287_v40, %v1192_v18 }
  0xe5   :  { %v181_v41 = vmul.f32 %v1201_v36, %v95_v8  ;;  %v206_v55 = vmul.f32 %v203_v54, %v1201_v36  ;;  %v205_v56 = vmul.f32 %v203_v54, %v173_v33  ;;  %v275_v58 = vmul.f32 %v273_v57, %v1206_v38 }
  0xe6   :  { %v251_v48 = vmul.f32 %v1212_v42, %v1165_v6  ;;  %v1229_v50 = vrot.slane %v288_v45, %v1192_v18  ;;  %v299_v52 = vmul.f32 %v1222_v47, %v1180_v9  ;;  %v276_v59 = vmul.f32 %v273_v57, %v1212_v42 }
  0xe7   :  { %139 = vrot.lane.b32.xlu1 %v132_v37, %s1105_s0  ;;  %v324_v62 = vmul.f32 %v322_v60, %v1222_v47  ;;  %v149_v1 = vmul.f32 %v147_v63, %v124_v25  ;;  %v198_v4 = vmul.f32 %v196_v0, %v173_v33  ;;  %v150_v24 = vmul.f32 %v147_v63, %v1196_v30 }
  0xe8   :  { %186 = vrot.lane.b32.xlu0 %v180_v39, %s1105_s0  ;;  %v300_v53 = vmul.f32 %v1229_v50, %v1180_v9  ;;  %v325_v61 = vmul.f32 %v322_v60, %v1229_v50  ;;  %v199_v27 = vmul.f32 %v196_v0, %v1201_v36 }
  0xeb   :  { %188 = vrot.lane.b32.xlu1 %v181_v41, %s1105_s0 }
  0xec   :  { %256 = vrot.lane.b32.xlu0 %v250_v46, %s1105_s0 }
  0xef   :  { %258 = vrot.lane.b32.xlu1 %v251_v48, %s1105_s0 }
  0xf0   :  { %162 = vrot.lane.b32.xlu0 %v157_v51, %s1105_s0 }
  0xf3   :  { %305 = vrot.lane.b32.xlu1 %v299_v52, %s1105_s0 }
  0xf4   :  { %307 = vrot.lane.b32.xlu0 %v300_v53, %s1105_s0 }
  0xf7   :  { %211 = vrot.lane.b32.xlu1 %v206_v55, %s1105_s0 }
  0xf8   :  { %209 = vrot.lane.b32.xlu0 %v205_v56, %s1105_s0 }
  0xfb   :  { %279 = vrot.lane.b32.xlu1 %v275_v58, %s1105_s0 }
  0xfc   :  { %265 = vrot.lane.b32.xlu0 %v1165_v6, %s1105_s0 }
  0xff   :  { %314 = vrot.lane.b32.xlu1 %v1180_v9, %s1105_s0 }
 0x100   :  { %281 = vrot.lane.b32.xlu0 %v276_v59, %s1105_s0 }
 0x103   :  { %330 = vrot.lane.b32.xlu1 %v325_v61, %s1105_s0 }
 0x104   :  { %328 = vrot.lane.b32.xlu0 %v324_v62, %s1105_s0 }
 0x155   :  { %v161_v2 = vpop.permute.xlu1 %160 }
 0x156   :  { %v166_v5 = vadd.f32 %v161_v2, %v149_v1  ;;  %v138_v6 = vpop.permute.xlu0 %137 }
 0x157   :  { %v143_v7 = vsub.f32 %v131_v34, %v138_v6 }
 0x158   :  { %v200_v8 = vadd.f32 %v198_v4, %v166_v5 }
 0x159   :  { %v140_v9 = vpop.permute.xlu1 %139  ;;  %v182_v10 = vadd.f32 %v180_v39, %v143_v7 }
 0x15a   :  { %v144_v11 = vsub.f32 %v132_v37, %v140_v9  ;;  %v187_v12 = vpop.permute.xlu0 %186 }
 0x15b   :  { %v192_v13 = vsub.f32 %v182_v10, %v187_v12 }
 0x15c   :  { %v183_v15 = vadd.f32 %v181_v41, %v144_v11 }
 0x15d   :  { %v189_v16 = vpop.permute.xlu1 %188  ;;  %v252_v17 = vadd.f32 %v250_v46, %v192_v13 }
 0x15e   :  { %v193_v19 = vsub.f32 %v183_v15, %v189_v16  ;;  %v257_v20 = vpop.permute.xlu0 %256 }
 0x15f   :  { %v262_v21 = vsub.f32 %v252_v17, %v257_v20 }
 0x160   :  { %v253_v22 = vadd.f32 %v251_v48, %v193_v19 }
 0x161   :  { %v259_v23 = vpop.permute.xlu1 %258  ;;  %v301_v31 = vadd.f32 %v299_v52, %v262_v21 }
 0x162   :  { %v263_v25 = vsub.f32 %v253_v22, %v259_v23  ;;  %v163_v26 = vpop.permute.xlu0 %162 }
 0x163   :  { %v167_v28 = vadd.f32 %v163_v26, %v150_v24 }
 0x164   :  { %v302_v29 = vadd.f32 %v300_v53, %v263_v25 }
 0x165   :  { %v306_v32 = vpop.permute.xlu1 %305  ;;  %v201_v34 = vadd.f32 %v199_v27, %v167_v28 }
 0x166   :  { %v1257_v33 = vsub.f32 %v301_v31, %v306_v32  ;;  %v308_v35 = vpop.permute.xlu0 %307 }
 0x167   :  { %v1259_v37 = vsub.f32 %v302_v29, %v308_v35 }
 0x168   :  { %vm356_vm3 = vcmp.eq.f32.partialorder %v1257_v33, 0.0  ;;  %v336_v32 = vmul.f32 %v1257_v33, %v1257_v33  ;;  %vm426_vm1 = vcmp.gt.f32.partialorder %v1257_v33, 0.0 }
 0x169   :  { %v212_v39 = vpop.permute.xlu1 %211  ;;  %v748_v30 = vcombine.low %v1257_v33, %v1259_v37  ;;  %vm357_vm5 = vcmp.eq.f32.partialorder %v1259_v37, 0.0  ;;  %v358_v40 = vsel %vm356_vm3, 1.0, %v1257_v33  ;;  %v337_v35 = vmul.f32 %v1259_v37, %v1259_v37 }
 0x16a   :  { %v210_v36 = vpop.permute.xlu0 %209  ;;  %v359_v41 = vsel %vm357_vm5, 1.0, %v1259_v37  ;;  %1073 = vrcp.f32 %v358_v40  ;;  %v216_v48 = vadd.f32 %v212_v39, %v201_v34 }
 0x16b   :  { %1012 = vmatmul.mubr.msk.f32.vlgmr.msra.gmra.mrb[2].mxu0 %vm749_vm4, %v748_v30  ;;  %1075 = vrcp.f32 %v359_v41  ;;  %v215_v46 = vadd.f32 %v210_v36, %v200_v8 }
 0x16d   :  { %v280_v44 = vpop.permute.xlu1 %279 }
 0x16e   :  { %v266_v45 = vpop.permute.xlu0 %265 }
 0x16f   :  { %v268_v51 = vmul.f32 %v266_v45, %v1206_v38  ;;  %v269_v52 = vmul.f32 %v266_v45, %v1212_v42 }
 0x171   :  { %v315_v53 = vpop.permute.xlu1 %314  ;;  %v270_v54 = vadd.f32 %v268_v51, %v215_v46  ;;  %v271_v55 = vadd.f32 %v269_v52, %v216_v48 }
 0x172   :  { %v317_v56 = vmul.f32 %v315_v53, %v1222_v47  ;;  %v318_v57 = vmul.f32 %v315_v53, %v1229_v50  ;;  %v282_v58 = vpop.permute.xlu0 %281 }
 0x173   :  { %v285_v59 = vadd.f32 %v280_v44, %v270_v54  ;;  %v286_v60 = vadd.f32 %v282_v58, %v271_v55 }
 0x174   :  { %v1074_v1 = vpop.eup %1073 }
 0x175   :  { %v331_v61 = vpop.permute.xlu1 %330  ;;  %v319_v62 = vadd.f32 %v317_v56, %v285_v59  ;;  %v320_v63 = vadd.f32 %v318_v57, %v286_v60  ;;  %v1076_v42 = vpop.eup %1075 }
 0x176   :  { %v329_v0 = vpop.permute.xlu0 %328 }
 0x177   :  { %v1276_v2 = vadd.f32 %v329_v0, %v319_v62  ;;  %v1278_v38 = vadd.f32 %v331_v61, %v320_v63 }
 0x179   :  { %v1281_v4 = vmul.f32 %v1074_v1, %v1276_v2  ;;  %v1284_v47 = vmul.f32 %v1076_v42, %v1278_v38  ;;  %v899_v10 = vcombine.low %v1276_v2, %v1278_v38  ;;  %v338_v26 = vmul.f32 %v1276_v2, %v1276_v2 }
 0x17a   :  { %v339_v29 = vmul.f32 %v1278_v38, %v1278_v38  ;;  %vm440_vm14 = vcmp.lt.f32.partialorder %v1276_v2, 0.0  ;;  %vm438_vm2 = vcmp.gt.f32.partialorder %v1276_v2, 0.0 }
 0x17b   :  { %v1287_v50 = vand.u32 2147483647, %v1281_v4  ;;  %v1290_v5 = vand.u32 2147483647, %v1284_v47  ;;  %v1324_v30 = vadd.f32 %v338_v26, %v336_v32  ;;  %vm366_vm12 = vcmp.lt.f32.partialorder %v1281_v4, 0.0 }
 0x17c   :  { %v1326_v40 = vadd.f32 %v339_v29, %v337_v35  ;;  %vm367_vm13 = vcmp.lt.f32.partialorder %v1284_v47, 0.0  ;;  %vm364_vm15 = vcmp.gt.f32.partialorder %v1281_v4, 0.0  ;;  %v368_v62 = vsel %vm366_vm12, -1.0, %v1103_v3 }
 0x17d   :  { %vm378_vm6 = vcmp.eq.f32.partialorder %v1287_v50, 0.0  ;;  %vm379_vm7 = vcmp.eq.f32.partialorder %v1290_v5, 0.0  ;;  %v384_v8 = vadd.f32 1.0, %v1287_v50  ;;  %v385_v9 = vadd.f32 1.0, %v1290_v5 }
 0x17e   :  { %v380_v6 = vsel %vm378_vm6, 1.0, %v1287_v50  ;;  %v381_v7 = vsel %vm379_vm7, 1.0, %v1290_v5  ;;  %v979_v13 = vadd.f32 -1.0, %v1287_v50  ;;  %v980_v17 = vadd.f32 -1.0, %v1290_v5 }
 0x17f   :  { %1077 = vrcp.f32 %v380_v6  ;;  %vm376_vm8 = vcmp.gt.f32.partialorder %v1287_v50, 0.41421357  ;;  %vm374_vm9 = vcmp.gt.f32.partialorder %v1287_v50, 2.4142137  ;;  %vm377_vm10 = vcmp.gt.f32.partialorder %v1290_v5, 0.41421357 }
 0x180   :  { %1079 = vrcp.f32 %v381_v7  ;;  %vm375_vm11 = vcmp.gt.f32.partialorder %v1290_v5, 2.4142137  ;;  %v398_v57 = vsel %vm376_vm8, 0.7853982, %v1103_v3  ;;  %v399_v59 = vsel %vm377_vm10, 0.7853982, %v1103_v3 }
 0x181   :  { %1081 = vrcp.f32 %v384_v8  ;;  %vm365_vm6 = vcmp.gt.f32.partialorder %v1284_v47, 0.0  ;;  %v369_v1 = vsel %vm367_vm13, -1.0, %v1103_v3  ;;  %v400_v42 = vsel %vm374_vm9, 1.5707964, %v398_v57 }
 0x182   :  { %1083 = vrcp.f32 %v385_v9  ;;  %v401_v7 = vsel %vm375_vm11, 1.5707964, %v399_v59  ;;  %vm441_vm7 = vcmp.lt.f32.partialorder %v1278_v38, 0.0  ;;  %v442_v8 = vsel %vm440_vm14, -1.5707964, %v1103_v3 }
 0x183   :  { %1085 = vrsqrt.f32 %v1324_v30  ;;  %v370_v9 = vsel %vm364_vm15, 1.0, %v368_v62  ;;  %vm429_vm12 = vcmp.ge.f32.partialorder %v1278_v38, 0.0  ;;  %vm344_vm13 = vcmp.eq.f32.partialorder %v1324_v30, inf }
 0x184   :  { %1087 = vrsqrt.f32 %v1326_v40  ;;  %vm351_vm14 = vcmp.eq.f32.partialorder %v1326_v40, inf  ;;  %vm346_vm15 = vcmp.eq.f32.partialorder %v1324_v30, 0.0  ;;  %v354_v29 = vand.u32 2147483648, %v1326_v40 }
 0x185   :  { %v1108_v57 = vmov 14   ;;  %v1109_v59 = vmov 15   ;;  %v1112_v62 = vmov 0  }
 0x186   :  { %1056 = vset.pattern.permute.xlu1 %v1108_v57 }
 0x189   :  { %v1078_v11 = vpop.eup %1077 }
 0x18a   :  { %v1080_v12 = vpop.eup %1079  ;;  %v388_v16 = vsub.f32 0.0, %v1078_v11 }
 0x18b   :  { %v1082_v15 = vpop.eup %1081  ;;  %v389_v20 = vsub.f32 0.0, %v1080_v12  ;;  %v371_v12 = vsel %vm365_vm6, 1.0, %v369_v1  ;;  %v1115_v1 = vmov 4  }
 0x18c   :  { %v1084_v19 = vpop.eup %1083  ;;  %v392_v21 = vmul.f32 %v1082_v15, %v979_v13  ;;  %v443_v15 = vsel %vm441_vm7, -1.5707964, %v1103_v3 }
 0x18d   :  { %v393_v22 = vmul.f32 %v1084_v19, %v980_v17  ;;  %v1086_v61 = vpop.eup %1085 }
 0x18e   :  { %v394_v23 = vsel %vm376_vm8, %v392_v21, %v1287_v50  ;;  %v1088_v0 = vpop.eup %1087  ;;  %vm449_vm8 = vcmask 60416   ;;  %v343_v47 = vmul.f32 %v1086_v61, %v1324_v30  ;;  %v1111_v61 = vmov 17  }
 0x18f   :  { %v395_v24 = vsel %vm377_vm10, %v393_v22, %v1290_v5  ;;  %v396_v25 = vsel %vm374_vm9, %v388_v16, %v394_v23  ;;  %vm427_vm10 = vcmp.gt.f32.partialorder %v1259_v37, 0.0  ;;  %vm428_vm9 = vcmp.ge.f32.partialorder %v1276_v2, 0.0 }
 0x190   :  { %v397_v27 = vsel %vm375_vm11, %v389_v20, %v395_v24  ;;  %v402_v28 = vmul.f32 %v396_v25, %v396_v25  ;;  %v350_v50 = vmul.f32 %v1088_v0, %v1326_v40  ;;  %vm439_vm11 = vcmp.gt.f32.partialorder %v1278_v38, 0.0 }
 0x191   :  { %v403_v31 = vmul.f32 %v397_v27, %v397_v27  ;;  %v444_v16 = vsel %vm438_vm2, 1.5707964, %v442_v8  ;;  %v345_v22 = vsel %vm344_vm13, %v1324_v30, %v343_v47  ;;  %v445_v24 = vsel %vm439_vm11, 1.5707964, %v443_v15 }
 0x192   :  { %v404_v34 = vmul.f32 0.080537446, %v402_v28  ;;  %v352_v26 = vsel %vm351_vm14, %v1326_v40, %v350_v50  ;;  %vm353_vm2 = vcmp.eq.f32.partialorder %v1326_v40, 0.0  ;;  %v1114_v0 = vmov 11  }
 0x193   :  { %v405_v39 = vmul.f32 0.080537446, %v403_v31 }
 0x194   :  { %v981_v36 = vadd.f32 -0.13877685, %v404_v34 }
 0x195   :  { %v982_v41 = vadd.f32 -0.13877685, %v405_v39 }
 0x196   :  { %v408_v44 = vmul.f32 %v981_v36, %v402_v28  ;;  %v1386_v36 = vsel %vm353_vm2, %v354_v29, %v352_v26  ;;  %v1118_v26 = vmov 7   ;;  %v1121_v29 = vmov 13  }
 0x197   :  { %v409_v45 = vmul.f32 %v982_v41, %v403_v31 }
 0x198   :  { %v410_v46 = vadd.f32 0.19977711, %v408_v44 }
 0x199   :  { %v411_v48 = vadd.f32 0.19977711, %v409_v45 }
 0x19a   :  { %v412_v51 = vmul.f32 %v410_v46, %v402_v28  ;;  %v451_v46 = vsel %vm449_vm8, %v1386_v36, 0.0 }
 0x19b   :  { %v413_v52 = vmul.f32 %v411_v48, %v403_v31 }
 0x19c   :  { %v983_v53 = vadd.f32 -0.3333295, %v412_v51  ;;  %v458_v51 = vmul.f32 %v1386_v36, %v1386_v36 }
 0x19d   :  { %v984_v54 = vadd.f32 -0.3333295, %v413_v52 }
 0x19e   :  { %v416_v55 = vmul.f32 %v983_v53, %v402_v28 }
 0x19f   :  { %v417_v56 = vmul.f32 %v984_v54, %v403_v31 }
 0x1a0   :  { %v418_v58 = vmul.f32 %v416_v55, %v396_v25  ;;  %v460_v55 = vsel %vm449_vm8, %v458_v51, 0.0  ;;  %v538_v51 = vsub.s32 1, %v1188_v14 }
 0x1a1   :  { %v419_v60 = vmul.f32 %v417_v56, %v397_v27 }
 0x1a2   :  { %v420_v63 = vadd.f32 %v418_v58, %v396_v25  ;;  %v347_v25 = vand.u32 2147483648, %v1324_v30  ;;  %v1407_v58 = vld [vmem:[%s1493_s3] sm:$0xf] }
 0x1a3   :  { %v421_v6 = vadd.f32 %v419_v60, %v397_v27  ;;  %v1110_v60 = vmov 16  }
 0x1a4   :  { %v422_v4 = vadd.f32 %v420_v63, %v400_v42  ;;  %v1375_v34 = vsel %vm346_vm15, %v347_v25, %v345_v22  ;;  %v1113_v63 = vmov 3   ;;  %v1117_v25 = vmov 1  }
 0x1a5   :  { %v423_v11 = vadd.f32 %v421_v6, %v401_v7  ;;  %v450_v37 = vsel %vm449_vm8, %v1375_v34, 0.0  ;;  %v457_v48 = vmul.f32 %v1375_v34, %v1375_v34  ;;  %1055 = vset.pattern.permute.xlu0 %v1113_v63 }
 0x1a6   :  { %v424_v13 = vmul.f32 %v422_v4, %v370_v9  ;;  %v452_v53 = vadd.f32 %v451_v46, %v450_v37 }
 0x1a7   :  { %v425_v5 = vmul.f32 %v423_v11, %v371_v12  ;;  %v459_v54 = vsel %vm449_vm8, %v457_v48, 0.0 }
 0x1a8   :  { %v430_v17 = vadd.f32 3.1415927, %v424_v13  ;;  %v985_v19 = vadd.f32 -3.1415927, %v424_v13  ;;  %v461_v56 = vadd.f32 %v460_v55, %v459_v54  ;;  %v1434_v55 = vsub.s32 3, %v1188_v14 }
 0x1a9   :  { %v431_v20 = vadd.f32 3.1415927, %v425_v5  ;;  %v986_v21 = vadd.f32 -3.1415927, %v425_v5 }
 0x1aa   :  { %v434_v23 = vsel %vm428_vm9, %v430_v17, %v985_v19 }
 0x1ab   :  { %v435_v27 = vsel %vm429_vm12, %v431_v20, %v986_v21  ;;  %v436_v28 = vsel %vm426_vm1, %v424_v13, %v434_v23 }
 0x1ac   :  { %v437_v31 = vsel %vm427_vm10, %v425_v5, %v435_v27  ;;  %v1373_v32 = vsel %vm356_vm3, %v444_v16, %v436_v28  ;;  %v1119_v27 = vmov 10   ;;  %v1120_v28 = vmov 12  }
 0x1ad   :  { %v1380_v35 = vsel %vm357_vm5, %v445_v24, %v437_v31  ;;  %v486_v39 = vsel %vm449_vm8, %v1373_v32, 0.0  ;;  %v492_v30 = vmul.f32 %v1373_v32, %v1373_v32  ;;  %v1116_v24 = vmov 2  }
 0x1ae   :  { %v487_v33 = vsel %vm449_vm8, %v1380_v35, 0.0  ;;  %v493_v41 = vmul.f32 %v1380_v35, %v1380_v35  ;;  %vm738_vm3 = vcmp.eq.s32.totalorder %v1214_v43, %v1188_v14 }
 0x1af   :  { %v488_v44 = vadd.f32 %v487_v33, %v486_v39  ;;  %v494_v40 = vsel %vm449_vm8, %v492_v30, 0.0  ;;  %1015 = vmatpush3.msk.msra.mxu1 %vm738_vm3, %v1107_v49 }
 0x1b0   :  { %v495_v45 = vsel %vm449_vm8, %v493_v41, 0.0  ;;  %1019 = vmatprep.subr.mxu1 %v1103_v3 }
 0x1b1   :  { %489 = vadd.xlane.f32.xlu0 %v488_v44  ;;  %v496_v52 = vadd.f32 %v495_v45, %v494_v40 }
 0x1b3   :  { %497 = vadd.xlane.f32.xlu1 %v496_v52  ;;  %v554_v52 = vsub.s32 2, %v1188_v14 }
 0x1b5   :  { %453 = vadd.xlane.f32.xlu0 %v452_v53 }
 0x1b9   :  { %462 = vadd.xlane.f32.xlu0 %v461_v56 }
 0x1c4   :  { %635 = vperm.xlu1 %1056, %v1407_v58  }
 0x1c8   :  { %1057 = vset.pattern.permute.xlu1 %v1109_v59 }
 0x1c9   :  { %651 = vperm.xlu1 %1057, %v1407_v58  }
 0x1cd   :  { %1058 = vset.pattern.permute.xlu1 %v1110_v60 }
 0x1ce   :  { %667 = vperm.xlu1 %1058, %v1407_v58  }
 0x1cf   :  { %515 = vperm.xlu0 %1055, %v1407_v58  }
 0x1d2   :  { %1059 = vset.pattern.permute.xlu1 %v1111_v61 }
 0x1d3   :  { %683 = vperm.xlu1 %1059, %v1407_v58   ;;  %1065 = vset.pattern.permute.xlu0 %v1114_v0 }
 0x1d4   :  { %545 = vperm.xlu0 %1065, %v1407_v58  }
 0x1d7   :  { %1060 = vset.pattern.permute.xlu1 %v1112_v62 }
 0x1d8   :  { %1068 = vset.pattern.permute.xlu0 %v1115_v1 }
 0x1d9   :  { %585 = vperm.xlu0 %1068, %v1407_v58  }
 0x23e   :  { %v1416_v42 = vpop.f32.mrb[2].mxu0  ;;  %v490_v7 = vpop.xlane.xlu0 %489 }
 0x23f   :  { %v1013_v6 = vpop.f32.mrb[3].mxu0  ;;  %v491_v4 = vmul.f32 0.0625, %v490_v7 }
 0x240   :  { %v498_v8 = vpop.xlane.xlu1 %497 }
 0x241   :  { %v499_v47 = vmul.f32 0.0625, %v498_v8  ;;  %v500_v12 = vmul.f32 %v491_v4, %v491_v4  ;;  %v502_v44 = vsub.f32 %v1373_v32, %v491_v4  ;;  %v503_v40 = vsub.f32 %v1380_v35, %v491_v4 }
 0x242   :  { %v454_v9 = vpop.xlane.xlu0 %453 }
 0x243   :  { %v1418_v11 = vmul.f32 0.0625, %v454_v9  ;;  %v501_v15 = vsub.f32 %v499_v47, %v500_v12 }
 0x244   :  { %v636_v31 = vpop.permute.xlu1 %635 }
 0x245   :  { %v465_v50 = vmul.f32 %v1418_v11, %v1418_v11  ;;  %v504_v19 = vadd.f32 1e-05, %v501_v15  ;;  %v467_v6 = vsub.f32 %v1375_v34, %v1418_v11 }
 0x246   :  { %v463_v13 = vpop.xlane.xlu0 %462 }
 0x247   :  { %v464_v5 = vmul.f32 0.0625, %v463_v13  ;;  %v468_v13 = vsub.f32 %v1386_v36, %v1418_v11 }
 0x248   :  { %v652_v39 = vpop.permute.xlu1 %651 }
 0x249   :  { %v466_v16 = vsub.f32 %v464_v5, %v465_v50 }
 0x24b   :  { %v469_v17 = vadd.f32 1e-05, %v466_v16 }
 0x24d   :  { %1089 = vrsqrt.f32 %v469_v17  ;;  %v668_v30 = vpop.permute.xlu1 %667 }
 0x24e   :  { %1091 = vrsqrt.f32 %v504_v19  ;;  %v516_v45 = vpop.permute.xlu0 %515 }
 0x252   :  { %v684_v33 = vpop.permute.xlu1 %683 }
 0x257   :  { %v1090_v20 = vpop.eup %1089 }
 0x258   :  { %v471_v21 = vmul.f32 %v1090_v20, %v1407_v58  ;;  %v1092_v22 = vpop.eup %1091 }
 0x259   :  { %v506_v23 = vmul.f32 %v1092_v22, %v1407_v58 }
 0x25a   :  { %474 = vperm.xlu1 %1060, %v471_v21  }
 0x25e   :  { %1061 = vset.pattern.permute.xlu1 %v1116_v24 }
 0x25f   :  { %509 = vperm.xlu1 %1061, %v506_v23  }
 0x263   :  { %1062 = vset.pattern.permute.xlu1 %v1117_v25 }
 0x264   :  { %481 = vperm.xlu1 %1062, %v1407_v58  }
 0x268   :  { %1063 = vset.pattern.permute.xlu1 %v1118_v26 }
 0x269   :  { %691 = vperm.xlu1 %1063, %v1407_v58  }
 0x26d   :  { %1064 = vset.pattern.permute.xlu1 %v1119_v27 }
 0x26e   :  { %529 = vperm.xlu1 %1064, %v1407_v58  }
 0x272   :  { %1066 = vset.pattern.permute.xlu1 %v1120_v28 }
 0x273   :  { %561 = vperm.xlu1 %1066, %v1407_v58  }
 0x277   :  { %1067 = vset.pattern.permute.xlu1 %v1121_v29 }
 0x278   :  { %577 = vperm.xlu1 %1067, %v1407_v58  }
 0x2d9   :  { %v475_v41 = vpop.permute.xlu1 %474 }
 0x2da   :  { %v477_v50 = vmul.f32 %v475_v41, %v467_v6  ;;  %v478_v20 = vmul.f32 %v475_v41, %v468_v13  ;;  %v546_v41 = vpop.permute.xlu0 %545 }
 0x2de   :  { %v510_v37 = vpop.permute.xlu1 %509 }
 0x2df   :  { %v512_v46 = vmul.f32 %v510_v37, %v502_v44  ;;  %v513_v48 = vmul.f32 %v510_v37, %v503_v40 }
 0x2e1   :  { %v518_v53 = vadd.f32 %v516_v45, %v512_v46  ;;  %v519_v54 = vadd.f32 %v516_v45, %v513_v48 }
 0x2e3   :  { %v629_v56 = vrot.slane %v518_v53, %v1192_v18  ;;  %v633_v57 = vrot.slane %v519_v54, %v1192_v18  ;;  %v645_v32 = vrot.slane %v518_v53, %v538_v51  ;;  %v649_v59 = vrot.slane %v519_v54, %v538_v51  ;;  %v482_v35 = vpop.permute.xlu1 %481 }
 0x2e4   :  { %v661_v60 = vrot.slane %v518_v53, %v554_v52  ;;  %v665_v61 = vrot.slane %v519_v54, %v554_v52  ;;  %v677_v47 = vrot.slane %v518_v53, %v1434_v55  ;;  %v681_v12 = vrot.slane %v519_v54, %v1434_v55 }
 0x2e5   :  { %v638_v62 = vmul.f32 %v636_v31, %v629_v56  ;;  %v639_v63 = vmul.f32 %v636_v31, %v633_v57  ;;  %v654_v0 = vmul.f32 %v652_v39, %v645_v32  ;;  %v655_v1 = vmul.f32 %v652_v39, %v649_v59 }
 0x2e6   :  { %v670_v7 = vmul.f32 %v668_v30, %v661_v60  ;;  %v671_v4 = vmul.f32 %v668_v30, %v665_v61  ;;  %v686_v17 = vmul.f32 %v684_v33, %v677_v47  ;;  %v687_v19 = vmul.f32 %v684_v33, %v681_v12 }
 0x2e7   :  { %v656_v8 = vadd.f32 %v654_v0, %v638_v62  ;;  %v657_v9 = vadd.f32 %v655_v1, %v639_v63  ;;  %v484_v21 = vadd.f32 %v482_v35, %v477_v50  ;;  %v485_v23 = vadd.f32 %v482_v35, %v478_v20 }
 0x2e8   :  { %v692_v5 = vpop.permute.xlu1 %691 }
 0x2e9   :  { %v672_v15 = vadd.f32 %v670_v7, %v656_v8  ;;  %v673_v16 = vadd.f32 %v671_v4, %v657_v9  ;;  %v539_v27 = vrot.slane %v484_v21, %v538_v51  ;;  %v543_v31 = vrot.slane %v485_v23, %v538_v51 }
 0x2ea   :  { %v523_v39 = vrot.slane %v484_v21, %v1192_v18  ;;  %v527_v30 = vrot.slane %v485_v23, %v1192_v18  ;;  %v555_v44 = vrot.slane %v484_v21, %v554_v52  ;;  %v559_v48 = vrot.slane %v485_v23, %v554_v52  ;;  %v586_v52 = vpop.permute.xlu0 %585 }
 0x2eb   :  { %v688_v34 = vadd.f32 %v686_v17, %v672_v15  ;;  %v689_v22 = vadd.f32 %v687_v19, %v673_v16  ;;  %v548_v56 = vmul.f32 %v546_v41, %v539_v27  ;;  %v549_v57 = vmul.f32 %v546_v41, %v543_v31 }
 0x2ec   :  { %v571_v35 = vrot.slane %v484_v21, %v1434_v55  ;;  %v575_v60 = vrot.slane %v485_v23, %v1434_v55  ;;  %v1122_v16 = vmov 8   ;;  %v1123_v17 = vmov 9  }
 0x2ed   :  { %v1444_v24 = vadd.f32 %v692_v5, %v688_v34  ;;  %v1446_v25 = vadd.f32 %v692_v5, %v689_v22  ;;  %v530_v26 = vpop.permute.xlu1 %529  ;;  %1069 = vset.pattern.permute.xlu1 %v1122_v16  ;;  %1070 = vset.pattern.permute.xlu0 %v1123_v17  ;;  %v1124_v41 = vmov 5  }
 0x2ee   :  { %v532_v45 = vmul.f32 %v530_v26, %v523_v39  ;;  %v533_v46 = vmul.f32 %v530_v26, %v527_v30 }
 0x2ef   :  { %v696_v36 = vsel %vm449_vm8, %v1444_v24, 0.0  ;;  %v697_v11 = vsel %vm449_vm8, %v1446_v25, 0.0  ;;  %v702_v28 = vmul.f32 %v1444_v24, %v1444_v24  ;;  %v703_v29 = vmul.f32 %v1446_v25, %v1446_v25 }
 0x2f0   :  { %v698_v33 = vadd.f32 %v697_v11, %v696_v36  ;;  %v550_v59 = vadd.f32 %v548_v56, %v532_v45  ;;  %v551_v18 = vadd.f32 %v549_v57, %v533_v46 }
 0x2f1   :  { %v704_v40 = vsel %vm449_vm8, %v702_v28, 0.0  ;;  %v705_v37 = vsel %vm449_vm8, %v703_v29, 0.0 }
 0x2f2   :  { %v562_v53 = vpop.permute.xlu1 %561  ;;  %699 = vadd.xlane.f32.xlu1 %v698_v33  ;;  %v706_v54 = vadd.f32 %v705_v37, %v704_v40  ;;  %v1125_v37 = vmov 6  }
 0x2f3   :  { %v564_v51 = vmul.f32 %v562_v53, %v555_v44  ;;  %v565_v32 = vmul.f32 %v562_v53, %v559_v48 }
 0x2f4   :  { %707 = vadd.xlane.f32.xlu0 %v706_v54 }
 0x2f5   :  { %v566_v62 = vadd.f32 %v564_v51, %v550_v59  ;;  %v567_v63 = vadd.f32 %v565_v32, %v551_v18 }
 0x2f7   :  { %v578_v61 = vpop.permute.xlu1 %577 }
 0x2f8   :  { %v580_v0 = vmul.f32 %v578_v61, %v571_v35  ;;  %v581_v1 = vmul.f32 %v578_v61, %v575_v60 }
 0x2fa   :  { %v582_v6 = vadd.f32 %v580_v0, %v566_v62  ;;  %v583_v7 = vadd.f32 %v581_v1, %v567_v63 }
 0x2fc   :  { %v588_v4 = vadd.f32 %v586_v52, %v582_v6  ;;  %v589_v8 = vadd.f32 %v586_v52, %v583_v7 }
 0x2fe   :  { %v590_v9 = vsel %vm449_vm8, %v588_v4, 0.0  ;;  %v591_v47 = vsel %vm449_vm8, %v589_v8, 0.0  ;;  %v596_v12 = vmul.f32 %v588_v4, %v588_v4  ;;  %v597_v13 = vmul.f32 %v589_v8, %v589_v8 }
 0x2ff   :  { %v592_v50 = vadd.f32 %v591_v47, %v590_v9 }
 0x300   :  { %v598_v5 = vsel %vm449_vm8, %v596_v12, 0.0  ;;  %v599_v55 = vsel %vm449_vm8, %v597_v13, 0.0 }
 0x301   :  { %593 = vadd.xlane.f32.xlu1 %v592_v50  ;;  %v600_v15 = vadd.f32 %v599_v55, %v598_v5 }
 0x303   :  { %601 = vadd.xlane.f32.xlu0 %v600_v15 }
 0x319   :  { %725 = vperm.xlu0 %1070, %v1407_v58  }
 0x37f   :  { %v700_v19 = vpop.xlane.xlu1 %699 }
 0x380   :  { %v701_v20 = vmul.f32 0.0625, %v700_v19 }
 0x381   :  { %v708_v21 = vpop.xlane.xlu0 %707 }
 0x382   :  { %v710_v34 = vmul.f32 %v701_v20, %v701_v20  ;;  %v709_v22 = vmul.f32 0.0625, %v708_v21  ;;  %v712_v46 = vsub.f32 %v1444_v24, %v701_v20  ;;  %v713_v48 = vsub.f32 %v1446_v25, %v701_v20 }
 0x383   :  { %v743_v25 = vadd.s32 16, %v1188_v14 }
 0x384   :  { %v711_v23 = vsub.f32 %v709_v22, %v710_v34 }
 0x385   :  { %vm744_vm5 = vcmp.eq.s32.totalorder %v1214_v43, %v743_v25 }
 0x386   :  { %v714_v26 = vadd.f32 1e-05, %v711_v23 }
 0x388   :  { %1093 = vrsqrt.f32 %v714_v26 }
 0x38e   :  { %v594_v27 = vpop.xlane.xlu1 %593 }
 0x38f   :  { %v595_v36 = vmul.f32 0.0625, %v594_v27 }
 0x390   :  { %v602_v11 = vpop.xlane.xlu0 %601 }
 0x391   :  { %v604_v28 = vmul.f32 %v595_v36, %v595_v36  ;;  %v603_v29 = vmul.f32 0.0625, %v602_v11  ;;  %v606_v32 = vsub.f32 %v588_v4, %v595_v36  ;;  %v607_v59 = vsub.f32 %v589_v8, %v595_v36 }
 0x392   :  { %v1094_v31 = vpop.eup %1093 }
 0x393   :  { %v605_v39 = vsub.f32 %v603_v29, %v604_v28  ;;  %v716_v30 = vmul.f32 %v1094_v31, %v1407_v58 }
 0x395   :  { %v608_v33 = vadd.f32 1e-05, %v605_v39  ;;  %719 = vperm.xlu1 %1069, %v716_v30  }
 0x397   :  { %1095 = vrsqrt.f32 %v608_v33 }
 0x398   :  { %v726_v56 = vpop.permute.xlu0 %725 }
 0x399   :  { %1071 = vset.pattern.permute.xlu1 %v1124_v41 }
 0x3a1   :  { %v1096_v44 = vpop.eup %1095 }
 0x3a2   :  { %v610_v40 = vmul.f32 %v1096_v44, %v1407_v58 }
 0x3a4   :  { %613 = vperm.xlu1 %1071, %v610_v40  }
 0x3a8   :  { %1072 = vset.pattern.permute.xlu1 %v1125_v37 }
 0x3a9   :  { %619 = vperm.xlu1 %1072, %v1407_v58  }
 0x414   :  { %v720_v45 = vpop.permute.xlu1 %719 }
 0x415   :  { %v722_v53 = vmul.f32 %v720_v45, %v712_v46  ;;  %v723_v54 = vmul.f32 %v720_v45, %v713_v48 }
 0x417   :  { %v728_v57 = vadd.f32 %v726_v56, %v722_v53  ;;  %v729_v51 = vadd.f32 %v726_v56, %v723_v54 }
 0x419   :  { %1097 = vtanh.f32 %v728_v57 }
 0x41a   :  { %1099 = vtanh.f32 %v729_v51 }
 0x423   :  { %v614_v58 = vpop.permute.xlu1 %613  ;;  %v1098_v63 = vpop.eup %1097 }
 0x424   :  { %v616_v18 = vmul.f32 %v614_v58, %v606_v32  ;;  %v617_v35 = vmul.f32 %v614_v58, %v607_v59  ;;  %v1100_v1 = vpop.eup %1099 }
 0x428   :  { %v620_v60 = vpop.permute.xlu1 %619 }
 0x429   :  { %v622_v61 = vadd.f32 %v620_v60, %v616_v18  ;;  %v623_v62 = vadd.f32 %v620_v60, %v617_v35 }
 0x42b   :  { %v624_v0 = vmax.f32 %v622_v61, 0.0  ;;  %v625_v24 = vmax.f32 %v623_v62, 0.0 }
 0x42d   :  { %v732_v52 = vadd.f32 %v1098_v63, %v624_v0  ;;  %v733_v6 = vadd.f32 %v1100_v1, %v625_v24 }
 0x42f   :  { %v824_v7 = vcombine.low %v732_v52, %v733_v6 }
 0x431   :  { %1017 = vmatmul.mubr.msk.f32.vlgmr.msra.gmra.mrb[0].mxu1 %vm749_vm4, %v824_v7 }
 0x432   :  { %1020 = vmatpush3.msk.msra.mxu1 %vm744_vm5, %v1107_v49  ;;  %1021 = vmatprep.mubr.msk.f32.mxu1 %vm1102_vm0, %v1103_v3 }
 0x439   :  { %1022 = vmatmul.mubr.msk.f32.vlgmr.msra.gmra.mrb[0].mxu1 %vm749_vm4, %v899_v10 }
 0x50c   :  { %v968_v4 = vpop.f32.mrb[0].mxu1 }
 0x50d   :  { %v1027_v14 = vadd.f32 %v968_v4, %v1416_v42  ;;  %v1023_v8 = vpop.f32.mrb[1].mxu1 }
 0x50f   :  { %973 = vst [vmem:[%s1494_s4] sm:$0xff] %v1027_v14 }

</bundles_post_ra>
